<compile_context>
chip_gen: v7x
topology: tpu7x:2x2x1
jax: 0.10.0
libtpu: 0.0.40
codegen_flags: <defaults>
</compile_context>

<pallas_src>
import jax
import jax.numpy as jnp
from jax import lax
from jax.experimental import pallas as pl
from jax.experimental.pallas import tpu as pltpu


def bottleneck_kernel(x_ref, w1_ref, b1_ref, w2_ref, b2_ref, w3_ref, b3_ref,
                      o_ref, base_ref):
    # x_ref:    (1, H, W, Cin)     bf16  -- full image for this batch element
    # o_ref:    (1, TH, W, Cin)    bf16  -- one row-tile of the output
    # base_ref: ((TH+2)*W, P)      bf16  -- conv1 output, flattened rows with
    #                                        one halo image-row above/below
    H, W, Cin = x_ref.shape[1], x_ref.shape[2], x_ref.shape[3]
    TH = o_ref.shape[1]
    P = w1_ref.shape[1]
    rows = TH * W

    t = pl.program_id(1)
    r0 = pl.multiple_of(t * TH, TH)          # first image row of this tile

    def conv1(x2d):                          # bf16 (rows, Cin) -> f32 (rows, P)
        y = jnp.dot(x2d, w1_ref[...], preferred_element_type=jnp.float32)
        return jnp.maximum(y + b1_ref[...], 0.0)

    # ---- conv1 + bn1 + relu: interior rows (one big matmul, aligned store) --
    x_int = x_ref[:, pl.ds(r0, TH), :, :].reshape(rows, Cin)
    base_ref[W:(TH + 1) * W, :] = conv1(x_int).astype(jnp.bfloat16)

    # ---- conv1 halo rows: one combined small matmul; zero out-of-image rows -
    top_r = jnp.maximum(r0 - 1, 0)
    bot_r = jnp.minimum(r0 + TH, H - 1)
    x_halo = jnp.concatenate(
        [x_ref[:, pl.ds(top_r, 1), :, :].reshape(W, Cin),
         x_ref[:, pl.ds(bot_r, 1), :, :].reshape(W, Cin)], axis=0)   # (2W, Cin)
    halo = conv1(x_halo)                                             # (2W, P)
    hrow = lax.broadcasted_iota(jnp.int32, (2 * W, 1), 0)
    hvalid = ((hrow < W) & (r0 > 0)) | ((hrow >= W) & (r0 + TH < H))
    halo = jnp.where(hvalid, halo, 0.0).astype(jnp.bfloat16)
    base_ref[0:W, :] = halo[0:W, :]
    base_ref[(TH + 1) * W:(TH + 2) * W, :] = halo[W:2 * W, :]

    # ---- conv2 (3x3, stride 1, pad 1) + bn2 + relu ---------------------------
    # Weights are laid out as w2[ky] : (P, 3P) with the N axis grouped by kx
    # (column tap).  Each ky tap reads a contiguous, sublane-aligned slice of
    # base_ref -- no im2col copies.  The +-1 column shifts are applied to the
    # f32 outputs with pltpu.roll (XLU) and masked at the image edges.
    yall = jnp.dot(base_ref[0:rows, :], w2_ref[0],
                   preferred_element_type=jnp.float32)
    yall = yall + jnp.dot(base_ref[W:W + rows, :], w2_ref[1],
                          preferred_element_type=jnp.float32)
    yall = yall + jnp.dot(base_ref[2 * W:2 * W + rows, :], w2_ref[2],
                          preferred_element_type=jnp.float32)        # (rows, 3P)

    col = lax.broadcasted_iota(jnp.int32, (rows, 1), 0) % W          # x coord
    y_l = jnp.where(col == 0, 0.0,
                    pltpu.roll(yall[:, 0:P], shift=1, axis=0))        # kx = 0
    y_c = yall[:, P:2 * P]                                            # kx = 1
    y_r = jnp.where(col == W - 1, 0.0,
                    pltpu.roll(yall[:, 2 * P:3 * P], shift=rows - 1, axis=0))
    out2 = jnp.maximum(y_l + y_c + y_r + b2_ref[...], 0.0)           # (rows, P)

    # ---- conv3 (1x1) + bn3 ---------------------------------------------------
    out3 = jnp.dot(out2.astype(jnp.bfloat16), w3_ref[...],
                   preferred_element_type=jnp.float32) + b3_ref[...]  # (rows, 4P)

    # ---- residual add + relu (re-read x from VMEM just before the add) ------
    res = x_ref[:, pl.ds(r0, TH), :, :].reshape(rows, Cin).astype(jnp.float32)
    o_ref[...] = jnp.maximum(out3 + res, 0.0).astype(jnp.bfloat16) \
                    .reshape(1, TH, W, Cin)


def _single_buffer_supported():
    if not hasattr(pl, "Buffered"):
        return False
    try:
        pl.BlockSpec((8, 128), lambda i: (0, 0), pipeline_mode=pl.Buffered(1))
        return True
    except TypeError:
        return False


def _vmem_estimate(TH, H, W, Cin, P, n_buf):
    """Rough per-step VMEM footprint in bytes (bf16 blocks, f32 live values)."""
    bf, f4 = 2, 4
    x_blk = n_buf * H * W * Cin * bf                       # full-image x block
    o_blk = 2 * TH * W * Cin * bf                          # output double buffer
    base = (TH + 2) * W * P * bf                           # conv1 scratch
    wts = n_buf * (Cin * P + 3 * P * 3 * P + P * 4 * P + 8 * P) * bf
    live = TH * W * (3 * P + 4 * P + 4 * P) * f4           # yall + out3 + res
    return x_blk + o_blk + base + wts + live


def _pick_tile_h(H, W, Cin, P, n_buf, budget):
    divisors = sorted((d for d in range(1, H + 1) if H % d == 0), reverse=True)
    for th in divisors:
        if _vmem_estimate(th, H, W, Cin, P, n_buf) <= budget:
            return th
    return divisors[-1]


def bottleneck_forward(x_nhwc, params, *, tile_h=None):
    """x_nhwc: (N, H, W, Cin) float32.  params: folded weights (make_params)."""
    N, H, W, Cin = x_nhwc.shape
    P = params["w1"].shape[1]
    assert Cin == 4 * P, "identity residual requires in_planes == 4 * out_planes"

    single_buf = _single_buffer_supported()
    n_buf = 1 if single_buf else 2

    if tile_h is not None:
        TH = tile_h
    else:
        TH = _pick_tile_h(H, W, Cin, P, n_buf, budget=40 * 2**20)
    assert H % TH == 0, "tile_h must divide H"
    n_tiles = H // TH

    est = _vmem_estimate(TH, H, W, Cin, P, n_buf)
    vmem_limit = int(min(48 * 2**20, max(32 * 2**20, int(est * 1.25) + (4 << 20))))

    x_bf = x_nhwc.astype(jnp.bfloat16)       # halves HBM->VMEM traffic

    def spec(shape, index_map):
        # Grid-invariant (or per-image) operands: single-buffer when supported.
        if single_buf:
            return pl.BlockSpec(shape, index_map, pipeline_mode=pl.Buffered(1))
        return pl.BlockSpec(shape, index_map)

    def w_spec(shape):
        return spec(shape, lambda n, t, _s=len(shape): (0,) * _s)

    grid_spec = pltpu.PrefetchScalarGridSpec(
        num_scalar_prefetch=0,
        grid=(N, n_tiles),
        in_specs=[
            spec((1, H, W, Cin), lambda n, t: (n, 0, 0, 0)),  # x (full image)
            w_spec((Cin, P)),          # w1  (BN1 scale folded in), bf16
            w_spec((1, P)),            # bn1 bias, f32
            w_spec((3, P, 3 * P)),     # w2  (ky, cin, kx*cout), BN2 folded, bf16
            w_spec((1, P)),            # bn2 bias, f32
            w_spec((P, 4 * P)),        # w3  (BN3 folded), bf16
            w_spec((1, 4 * P)),        # bn3 bias, f32
        ],
        out_specs=pl.BlockSpec((1, TH, W, Cin), lambda n, t: (n, t, 0, 0)),
        scratch_shapes=[
            pltpu.VMEM(((TH + 2) * W, P), jnp.bfloat16),   # conv1 out + row halo
        ],
    )

    # Megacore: split on batch when possible so both cores do not re-fetch the
    # same full-image x block; only mark the row-tile axis parallel when N==1.
    dims = ("parallel", "arbitrary") if N > 1 else ("parallel", "parallel")

    return pl.pallas_call(
        bottleneck_kernel,
        out_shape=jax.ShapeDtypeStruct((N, H, W, Cin), jnp.bfloat16),
        grid_spec=grid_spec,
        compiler_params=pltpu.CompilerParams(
            dimension_semantics=dims,
            vmem_limit_bytes=vmem_limit),
    )(x_bf,
      params["w1"], params["b1"],
      params["w2"], params["b2"],
      params["w3"], params["b3"])


def fold_bn(gamma, beta, mean, var, eps=1e-5):
    scale = gamma / jnp.sqrt(var + eps)
    bias = beta - mean * scale
    return scale, bias


def make_params(key, in_planes, out_planes):
    """Deterministic synthetic parameters matching the PyTorch module shapes.

    BN scales are folded into the conv weights (per output channel); only the
    per-channel biases remain as separate kernel inputs.  Conv weights bf16,
    biases f32.
    """
    P = out_planes
    ks = jax.random.split(key, 12)
    # PyTorch conv weights: (Cout, Cin, kh, kw)
    w1_t = jax.random.normal(ks[0], (P, in_planes, 1, 1), jnp.float32) * 0.1
    w2_t = jax.random.normal(ks[1], (P, P, 3, 3), jnp.float32) * 0.1
    w3_t = jax.random.normal(ks[2], (4 * P, P, 1, 1), jnp.float32) * 0.1
    bn = {}
    for i, c in zip((1, 2, 3), (P, P, 4 * P)):
        g = 1.0 + 0.1 * jax.random.normal(ks[2 + i], (c,), jnp.float32)
        b = 0.1 * jax.random.normal(ks[5 + i], (c,), jnp.float32)
        m = 0.1 * jax.random.normal(ks[8 + i], (c,), jnp.float32)
        v = jnp.abs(jax.random.normal(jax.random.fold_in(ks[8 + i], 1),
                                      (c,), jnp.float32)) + 0.5
        bn[i] = (g, b, m, v)

    s1, b1 = fold_bn(*bn[1])
    s2, b2 = fold_bn(*bn[2])
    s3, b3 = fold_bn(*bn[3])

    # Kernel layouts (BN scale folded into the output-channel axis):
    #   w1: (Cin, P)
    #   w2: (3, P, 3P)  -- [ky, cin, kx*P + cout]
    #   w3: (P, 4P)
    w1 = jnp.transpose(w1_t[:, :, 0, 0], (1, 0)) * s1[None, :]
    w2 = (jnp.transpose(w2_t, (2, 1, 3, 0))            # (ky, cin, kx, cout)
          * s2[None, None, None, :]).reshape(3, P, 3 * P)
    w3 = jnp.transpose(w3_t[:, :, 0, 0], (1, 0)) * s3[None, :]

    params = {
        "w1": w1.astype(jnp.bfloat16), "b1": b1[None, :].astype(jnp.float32),
        "w2": w2.astype(jnp.bfloat16), "b2": b2[None, :].astype(jnp.float32),
        "w3": w3.astype(jnp.bfloat16), "b3": b3[None, :].astype(jnp.float32),
        # torch-layout weights kept for the pure-JAX reference check
        "_w1_t": w1_t, "_w2_t": w2_t, "_w3_t": w3_t, "_bn": bn,
    }
    return params


def reference_forward(x_nchw, params):
    """Pure-JAX f32 reference (NCHW, like PyTorch) for correctness checking."""
    def conv(x, w, pad):
        return lax.conv_general_dilated(
            x, w, window_strides=(1, 1), padding=pad,
            dimension_numbers=("NCHW", "OIHW", "NCHW"))

    def bn(x, stats, eps=1e-5):
        g, b, m, v = stats
        sh = (1, -1, 1, 1)
        return (x - m.reshape(sh)) / jnp.sqrt(v.reshape(sh) + eps) * \
               g.reshape(sh) + b.reshape(sh)

    out = jax.nn.relu(bn(conv(x_nchw, params["_w1_t"], "VALID"), params["_bn"][1]))
    out = jax.nn.relu(bn(conv(out, params["_w2_t"], ((1, 1), (1, 1))), params["_bn"][2]))
    out = bn(conv(out, params["_w3_t"], "VALID"), params["_bn"][3])
    return jax.nn.relu(out + x_nchw)


if __name__ == "__main__":
    in_planes, out_planes = 16, 4        # expansion = 4 -> residual channels match
    N, H, W = 2, 16, 16

    key = jax.random.PRNGKey(0)
    kx, kp = jax.random.split(key)
    x_nchw = jax.random.normal(kx, (N, in_planes, H, W), jnp.float32)
    params = make_params(kp, in_planes, out_planes)

    # NCHW (PyTorch) -> NHWC (kernel layout)
    x_nhwc = jnp.transpose(x_nchw, (0, 2, 3, 1))

    out_nhwc = bottleneck_forward(x_nhwc, params)          # TH chosen automatically
    out_nhwc = jax.block_until_ready(out_nhwc)
    out_nchw = jnp.transpose(out_nhwc.astype(jnp.float32), (0, 3, 1, 2))

    ref = reference_forward(x_nchw, params)
    max_err = jnp.max(jnp.abs(out_nchw - ref))
    # bf16 matmul/IO path vs f32 reference: allow bf16-level tolerance.
    assert jnp.allclose(out_nchw, ref, atol=1e-1, rtol=1e-1), \
        f"max abs err {max_err}"

    print("KERNEL_OK")
</pallas_src>

<mosaic_0001>
module attributes {stable_mosaic.version = 11 : i64} {
  func.func @bottleneck_kernel(%arg0: i32, %arg1: i32, %arg2: memref<1x16x16x16xbf16, #tpu.memory_space<vmem>>, %arg3: memref<16x4xbf16, #tpu.memory_space<vmem>>, %arg4: memref<1x4xf32, #tpu.memory_space<vmem>>, %arg5: memref<3x4x12xbf16, #tpu.memory_space<vmem>>, %arg6: memref<1x4xf32, #tpu.memory_space<vmem>>, %arg7: memref<4x16xbf16, #tpu.memory_space<vmem>>, %arg8: memref<1x16xf32, #tpu.memory_space<vmem>>, %arg9: memref<1x16x16x16xbf16, #tpu.memory_space<vmem>>, %arg10: memref<288x4xbf16, #tpu.memory_space<vmem>>) attributes {dimension_semantics = [#tpu.dimension_semantics<parallel>, #tpu.dimension_semantics<arbitrary>], iteration_bounds = array<i64: 2, 1>, scalar_prefetch = 0 : i64, scratch_operands = 1 : i64, tpu.core_type = #tpu.core_type<tc>, window_params = [{pipeline_mode = #tpu.pipeline_mode<synchronous>, transform_indices = @transform_0, window_bounds = array<i64: 1, 16, 16, 16>}, {pipeline_mode = #tpu.pipeline_mode<synchronous>, transform_indices = @transform_1, window_bounds = array<i64: 16, 4>}, {pipeline_mode = #tpu.pipeline_mode<synchronous>, transform_indices = @transform_2, window_bounds = array<i64: 1, 4>}, {pipeline_mode = #tpu.pipeline_mode<synchronous>, transform_indices = @transform_3, window_bounds = array<i64: 3, 4, 12>}, {pipeline_mode = #tpu.pipeline_mode<synchronous>, transform_indices = @transform_4, window_bounds = array<i64: 1, 4>}, {pipeline_mode = #tpu.pipeline_mode<synchronous>, transform_indices = @transform_5, window_bounds = array<i64: 4, 16>}, {pipeline_mode = #tpu.pipeline_mode<synchronous>, transform_indices = @transform_6, window_bounds = array<i64: 1, 16>}, {transform_indices = @transform_7, window_bounds = array<i64: 1, 16, 16, 16>}]} {
    %c16_i32 = arith.constant 16 : i32
    %0 = arith.muli %arg1, %c16_i32 : i32
    %1 = tpu.assume_multiple %0, 16 : i32
    %c0 = arith.constant 0 : index
    %2 = arith.index_cast %1 : i32 to index
    %c0_0 = arith.constant 0 : index
    %c0_1 = arith.constant 0 : index
    %3 = vector.load %arg2[%c0, %2, %c0_0, %c0_1] : memref<1x16x16x16xbf16, #tpu.memory_space<vmem>>, vector<1x16x16x16xbf16>
    %4 = vector.shape_cast %3 : vector<1x16x16x16xbf16> to vector<256x16xbf16>
    %c0_2 = arith.constant 0 : index
    %c0_3 = arith.constant 0 : index
    %5 = vector.load %arg3[%c0_2, %c0_3] : memref<16x4xbf16, #tpu.memory_space<vmem>>, vector<16x4xbf16>
    %cst = arith.constant dense<0.000000e+00> : vector<256x4xf32>
    %6 = tpu.matmul %4, %5, %cst {dimension_numbers = #tpu.dot_dimension_numbers<[1], [0], [0], [1], [0, 0, 1, 1], [], []>} : vector<256x16xbf16>, vector<16x4xbf16>, vector<256x4xf32> -> vector<256x4xf32>
    %c0_4 = arith.constant 0 : index
    %c0_5 = arith.constant 0 : index
    %7 = vector.load %arg4[%c0_4, %c0_5] : memref<1x4xf32, #tpu.memory_space<vmem>>, vector<1x4xf32>
    %8 = vector.broadcast %7 : vector<1x4xf32> to vector<256x4xf32>
    %9 = arith.addf %6, %8 : vector<256x4xf32>
    %cst_6 = arith.constant 0.000000e+00 : f32
    %10 = vector.broadcast %cst_6 : f32 to vector<256x4xf32>
    %11 = arith.maximumf %9, %10 : vector<256x4xf32>
    %12 = arith.truncf %11 : vector<256x4xf32> to vector<256x4xbf16>
    %c16 = arith.constant 16 : index
    %c0_7 = arith.constant 0 : index
    %13 = vector.load %arg10[%c16, %c0_7] : memref<288x4xbf16, #tpu.memory_space<vmem>>, vector<256x4xbf16>
    tpu.vector_store %arg10[%c16, %c0_7], %12 {strides = array<i32>} : memref<288x4xbf16, #tpu.memory_space<vmem>>, vector<256x4xbf16>,
    %c1_i32 = arith.constant 1 : i32
    %14 = arith.subi %1, %c1_i32 : i32
    %c0_i32 = arith.constant 0 : i32
    %15 = arith.maxsi %14, %c0_i32 : i32
    %c16_i32_8 = arith.constant 16 : i32
    %16 = arith.addi %1, %c16_i32_8 : i32
    %c15_i32 = arith.constant 15 : i32
    %17 = arith.minsi %16, %c15_i32 : i32
    %c0_9 = arith.constant 0 : index
    %18 = arith.index_cast %15 : i32 to index
    %c0_10 = arith.constant 0 : index
    %c0_11 = arith.constant 0 : index
    %19 = vector.load %arg2[%c0_9, %18, %c0_10, %c0_11] : memref<1x16x16x16xbf16, #tpu.memory_space<vmem>>, vector<1x1x16x16xbf16>
    %20 = vector.shape_cast %19 : vector<1x1x16x16xbf16> to vector<16x16xbf16>
    %c0_12 = arith.constant 0 : index
    %21 = arith.index_cast %17 : i32 to index
    %c0_13 = arith.constant 0 : index
    %c0_14 = arith.constant 0 : index
    %22 = vector.load %arg2[%c0_12, %21, %c0_13, %c0_14] : memref<1x16x16x16xbf16, #tpu.memory_space<vmem>>, vector<1x1x16x16xbf16>
    %23 = vector.shape_cast %22 : vector<1x1x16x16xbf16> to vector<16x16xbf16>
    %24 = tpu.concatenate %20, %23 in 0 : vector<16x16xbf16>, vector<16x16xbf16> -> vector<32x16xbf16>
    %c0_15 = arith.constant 0 : index
    %c0_16 = arith.constant 0 : index
    %25 = vector.load %arg3[%c0_15, %c0_16] : memref<16x4xbf16, #tpu.memory_space<vmem>>, vector<16x4xbf16>
    %cst_17 = arith.constant dense<0.000000e+00> : vector<32x4xf32>
    %26 = tpu.matmul %24, %25, %cst_17 {dimension_numbers = #tpu.dot_dimension_numbers<[1], [0], [0], [1], [0, 0, 1, 1], [], []>} : vector<32x16xbf16>, vector<16x4xbf16>, vector<32x4xf32> -> vector<32x4xf32>
    %c0_18 = arith.constant 0 : index
    %c0_19 = arith.constant 0 : index
    %27 = vector.load %arg4[%c0_18, %c0_19] : memref<1x4xf32, #tpu.memory_space<vmem>>, vector<1x4xf32>
    %28 = vector.broadcast %27 : vector<1x4xf32> to vector<32x4xf32>
    %29 = arith.addf %26, %28 : vector<32x4xf32>
    %cst_20 = arith.constant 0.000000e+00 : f32
    %30 = vector.broadcast %cst_20 : f32 to vector<32x4xf32>
    %31 = arith.maximumf %29, %30 : vector<32x4xf32>
    %32 = tpu.iota {dimensions = array<i32: 0>} : vector<32x1xi32>
    %c16_i32_21 = arith.constant 16 : i32
    %33 = vector.broadcast %c16_i32_21 : i32 to vector<32x1xi32>
    %34 = arith.cmpi slt, %32, %33 : vector<32x1xi32>
    %c0_i32_22 = arith.constant 0 : i32
    %35 = arith.cmpi sgt, %1, %c0_i32_22 : i32
    %36 = vector.broadcast %35 : i1 to vector<32x1xi1>
    %37 = arith.andi %34, %36 : vector<32x1xi1>
    %c16_i32_23 = arith.constant 16 : i32
    %38 = vector.broadcast %c16_i32_23 : i32 to vector<32x1xi32>
    %39 = arith.cmpi sge, %32, %38 : vector<32x1xi32>
    %c16_i32_24 = arith.constant 16 : i32
    %40 = arith.addi %1, %c16_i32_24 : i32
    %c16_i32_25 = arith.constant 16 : i32
    %41 = arith.cmpi slt, %40, %c16_i32_25 : i32
    %42 = vector.broadcast %41 : i1 to vector<32x1xi1>
    %43 = arith.andi %39, %42 : vector<32x1xi1>
    %44 = arith.ori %37, %43 : vector<32x1xi1>
    %cst_26 = arith.constant 0.000000e+00 : f32
    %45 = vector.shape_cast %44 : vector<32x1xi1> to vector<32x1xi1>
    %46 = vector.broadcast %45 : vector<32x1xi1> to vector<32x4xi1>
    %47 = vector.broadcast %cst_26 : f32 to vector<32x4xf32>
    %48 = arith.select %46, %31, %47 : vector<32x4xi1>, vector<32x4xf32>
    %49 = arith.truncf %48 : vector<32x4xf32> to vector<32x4xbf16>
    %50 = vector.extract_strided_slice %49 {offsets = [0, 0], sizes = [16, 4], strides = [1, 1]} : vector<32x4xbf16> to vector<16x4xbf16>
    %c0_27 = arith.constant 0 : index
    %c0_28 = arith.constant 0 : index
    %51 = vector.load %arg10[%c0_27, %c0_28] : memref<288x4xbf16, #tpu.memory_space<vmem>>, vector<16x4xbf16>
    tpu.vector_store %arg10[%c0_27, %c0_28], %50 {strides = array<i32>} : memref<288x4xbf16, #tpu.memory_space<vmem>>, vector<16x4xbf16>,
    %52 = vector.extract_strided_slice %49 {offsets = [16, 0], sizes = [16, 4], strides = [1, 1]} : vector<32x4xbf16> to vector<16x4xbf16>
    %c272 = arith.constant 272 : index
    %c0_29 = arith.constant 0 : index
    %53 = vector.load %arg10[%c272, %c0_29] : memref<288x4xbf16, #tpu.memory_space<vmem>>, vector<16x4xbf16>
    tpu.vector_store %arg10[%c272, %c0_29], %52 {strides = array<i32>} : memref<288x4xbf16, #tpu.memory_space<vmem>>, vector<16x4xbf16>,
    %c0_30 = arith.constant 0 : index
    %c0_31 = arith.constant 0 : index
    %54 = vector.load %arg10[%c0_30, %c0_31] : memref<288x4xbf16, #tpu.memory_space<vmem>>, vector<256x4xbf16>
    %c0_32 = arith.constant 0 : index
    %c0_33 = arith.constant 0 : index
    %c0_34 = arith.constant 0 : index
    %55 = vector.load %arg5[%c0_32, %c0_33, %c0_34] : memref<3x4x12xbf16, #tpu.memory_space<vmem>>, vector<1x4x12xbf16>
    %56 = vector.shape_cast %55 : vector<1x4x12xbf16> to vector<4x12xbf16>
    %cst_35 = arith.constant dense<0.000000e+00> : vector<256x12xf32>
    %57 = tpu.matmul %54, %56, %cst_35 {dimension_numbers = #tpu.dot_dimension_numbers<[1], [0], [0], [1], [0, 0, 1, 1], [], []>} : vector<256x4xbf16>, vector<4x12xbf16>, vector<256x12xf32> -> vector<256x12xf32>
    %c16_36 = arith.constant 16 : index
    %c0_37 = arith.constant 0 : index
    %58 = vector.load %arg10[%c16_36, %c0_37] : memref<288x4xbf16, #tpu.memory_space<vmem>>, vector<256x4xbf16>
    %c1 = arith.constant 1 : index
    %c0_38 = arith.constant 0 : index
    %c0_39 = arith.constant 0 : index
    %59 = vector.load %arg5[%c1, %c0_38, %c0_39] : memref<3x4x12xbf16, #tpu.memory_space<vmem>>, vector<1x4x12xbf16>
    %60 = vector.shape_cast %59 : vector<1x4x12xbf16> to vector<4x12xbf16>
    %cst_40 = arith.constant dense<0.000000e+00> : vector<256x12xf32>
    %61 = tpu.matmul %58, %60, %cst_40 {dimension_numbers = #tpu.dot_dimension_numbers<[1], [0], [0], [1], [0, 0, 1, 1], [], []>} : vector<256x4xbf16>, vector<4x12xbf16>, vector<256x12xf32> -> vector<256x12xf32>
    %62 = arith.addf %57, %61 : vector<256x12xf32>
    %c32 = arith.constant 32 : index
    %c0_41 = arith.constant 0 : index
    %63 = vector.load %arg10[%c32, %c0_41] : memref<288x4xbf16, #tpu.memory_space<vmem>>, vector<256x4xbf16>
    %c2 = arith.constant 2 : index
    %c0_42 = arith.constant 0 : index
    %c0_43 = arith.constant 0 : index
    %64 = vector.load %arg5[%c2, %c0_42, %c0_43] : memref<3x4x12xbf16, #tpu.memory_space<vmem>>, vector<1x4x12xbf16>
    %65 = vector.shape_cast %64 : vector<1x4x12xbf16> to vector<4x12xbf16>
    %cst_44 = arith.constant dense<0.000000e+00> : vector<256x12xf32>
    %66 = tpu.matmul %63, %65, %cst_44 {dimension_numbers = #tpu.dot_dimension_numbers<[1], [0], [0], [1], [0, 0, 1, 1], [], []>} : vector<256x4xbf16>, vector<4x12xbf16>, vector<256x12xf32> -> vector<256x12xf32>
    %67 = arith.addf %62, %66 : vector<256x12xf32>
    %68 = tpu.iota {dimensions = array<i32: 0>} : vector<256x1xi32>
    %c16_i32_45 = arith.constant 16 : i32
    %c0_i32_46 = arith.constant 0 : i32
    %69 = arith.cmpi eq, %c16_i32_45, %c0_i32_46 : i32
    %c1_i32_47 = arith.constant 1 : i32
    %70 = arith.select %69, %c1_i32_47, %c16_i32_45 : i32
    %71 = vector.broadcast %70 : i32 to vector<256x1xi32>
    %72 = arith.remsi %68, %71 : vector<256x1xi32>
    %c0_i32_48 = arith.constant 0 : i32
    %73 = vector.broadcast %c0_i32_48 : i32 to vector<256x1xi32>
    %74 = arith.cmpi ne, %72, %73 : vector<256x1xi32>
    %c0_i32_49 = arith.constant 0 : i32
    %75 = vector.broadcast %c0_i32_49 : i32 to vector<256x1xi32>
    %76 = arith.cmpi slt, %72, %75 : vector<256x1xi32>
    %c0_i32_50 = arith.constant 0 : i32
    %77 = arith.cmpi slt, %70, %c0_i32_50 : i32
    %78 = vector.broadcast %77 : i1 to vector<256x1xi1>
    %79 = vector.broadcast %78 : vector<256x1xi1> to vector<256x1xi1>
    %80 = arith.xori %76, %79 : vector<256x1xi1>
    %81 = arith.andi %80, %74 : vector<256x1xi1>
    %82 = vector.broadcast %70 : i32 to vector<256x1xi32>
    %83 = arith.addi %72, %82 : vector<256x1xi32>
    %84 = arith.select %81, %83, %72 : vector<256x1xi1>, vector<256x1xi32>
    %c0_i32_51 = arith.constant 0 : i32
    %85 = vector.broadcast %c0_i32_51 : i32 to vector<256x1xi32>
    %86 = arith.cmpi eq, %84, %85 : vector<256x1xi32>
    %87 = vector.extract_strided_slice %67 {offsets = [0, 0], sizes = [256, 4], strides = [1, 1]} : vector<256x12xf32> to vector<256x4xf32>
    %c1_i32_52 = arith.constant 1 : i32
    %88 = tpu.dynamic_rotate %87 by %c1_i32_52 dim 0 : vector<256x4xf32>, i32 -> vector<256x4xf32>
    %cst_53 = arith.constant 0.000000e+00 : f32
    %89 = vector.shape_cast %86 : vector<256x1xi1> to vector<256x1xi1>
    %90 = vector.broadcast %89 : vector<256x1xi1> to vector<256x4xi1>
    %91 = vector.broadcast %cst_53 : f32 to vector<256x4xf32>
    %92 = arith.select %90, %91, %88 : vector<256x4xi1>, vector<256x4xf32>
    %93 = vector.extract_strided_slice %67 {offsets = [0, 4], sizes = [256, 4], strides = [1, 1]} : vector<256x12xf32> to vector<256x4xf32>
    %c15_i32_54 = arith.constant 15 : i32
    %94 = vector.broadcast %c15_i32_54 : i32 to vector<256x1xi32>
    %95 = arith.cmpi eq, %84, %94 : vector<256x1xi32>
    %96 = vector.extract_strided_slice %67 {offsets = [0, 8], sizes = [256, 4], strides = [1, 1]} : vector<256x12xf32> to vector<256x4xf32>
    %c255_i32 = arith.constant 255 : i32
    %97 = tpu.dynamic_rotate %96 by %c255_i32 dim 0 : vector<256x4xf32>, i32 -> vector<256x4xf32>
    %cst_55 = arith.constant 0.000000e+00 : f32
    %98 = vector.shape_cast %95 : vector<256x1xi1> to vector<256x1xi1>
    %99 = vector.broadcast %98 : vector<256x1xi1> to vector<256x4xi1>
    %100 = vector.broadcast %cst_55 : f32 to vector<256x4xf32>
    %101 = arith.select %99, %100, %97 : vector<256x4xi1>, vector<256x4xf32>
    %102 = arith.addf %92, %93 : vector<256x4xf32>
    %103 = arith.addf %102, %101 : vector<256x4xf32>
    %c0_56 = arith.constant 0 : index
    %c0_57 = arith.constant 0 : index
    %104 = vector.load %arg6[%c0_56, %c0_57] : memref<1x4xf32, #tpu.memory_space<vmem>>, vector<1x4xf32>
    %105 = vector.broadcast %104 : vector<1x4xf32> to vector<256x4xf32>
    %106 = arith.addf %103, %105 : vector<256x4xf32>
    %cst_58 = arith.constant 0.000000e+00 : f32
    %107 = vector.broadcast %cst_58 : f32 to vector<256x4xf32>
    %108 = arith.maximumf %106, %107 : vector<256x4xf32>
    %109 = arith.truncf %108 : vector<256x4xf32> to vector<256x4xbf16>
    %c0_59 = arith.constant 0 : index
    %c0_60 = arith.constant 0 : index
    %110 = vector.load %arg7[%c0_59, %c0_60] : memref<4x16xbf16, #tpu.memory_space<vmem>>, vector<4x16xbf16>
    %cst_61 = arith.constant dense<0.000000e+00> : vector<256x16xf32>
    %111 = tpu.matmul %109, %110, %cst_61 {dimension_numbers = #tpu.dot_dimension_numbers<[1], [0], [0], [1], [0, 0, 1, 1], [], []>} : vector<256x4xbf16>, vector<4x16xbf16>, vector<256x16xf32> -> vector<256x16xf32>
    %c0_62 = arith.constant 0 : index
    %c0_63 = arith.constant 0 : index
    %112 = vector.load %arg8[%c0_62, %c0_63] : memref<1x16xf32, #tpu.memory_space<vmem>>, vector<1x16xf32>
    %113 = vector.broadcast %112 : vector<1x16xf32> to vector<256x16xf32>
    %114 = arith.addf %111, %113 : vector<256x16xf32>
    %c0_64 = arith.constant 0 : index
    %115 = arith.index_cast %1 : i32 to index
    %c0_65 = arith.constant 0 : index
    %c0_66 = arith.constant 0 : index
    %116 = vector.load %arg2[%c0_64, %115, %c0_65, %c0_66] : memref<1x16x16x16xbf16, #tpu.memory_space<vmem>>, vector<1x16x16x16xbf16>
    %117 = vector.shape_cast %116 : vector<1x16x16x16xbf16> to vector<256x16xbf16>
    %118 = arith.extf %117 : vector<256x16xbf16> to vector<256x16xf32>
    %119 = arith.addf %114, %118 : vector<256x16xf32>
    %cst_67 = arith.constant 0.000000e+00 : f32
    %120 = vector.broadcast %cst_67 : f32 to vector<256x16xf32>
    %121 = arith.maximumf %119, %120 : vector<256x16xf32>
    %122 = arith.truncf %121 : vector<256x16xf32> to vector<256x16xbf16>
    %123 = vector.shape_cast %122 : vector<256x16xbf16> to vector<1x16x16x16xbf16>
    %c0_68 = arith.constant 0 : index
    %c0_69 = arith.constant 0 : index
    %c0_70 = arith.constant 0 : index
    %c0_71 = arith.constant 0 : index
    %124 = vector.load %arg9[%c0_68, %c0_69, %c0_70, %c0_71] : memref<1x16x16x16xbf16, #tpu.memory_space<vmem>>, vector<1x16x16x16xbf16>
    tpu.vector_store %arg9[%c0_68, %c0_69, %c0_70, %c0_71], %123 {strides = array<i32>} : memref<1x16x16x16xbf16, #tpu.memory_space<vmem>>, vector<1x16x16x16xbf16>,
    return
  }
  func.func @transform_0(%arg0: i32, %arg1: i32) -> (i32, i32, i32, i32) {
    %c0_i32 = arith.constant 0 : i32
    %c0_i32_0 = arith.constant 0 : i32
    %c0_i32_1 = arith.constant 0 : i32
    %c0_i32_2 = arith.constant 0 : i32
    return %arg0, %c0_i32, %c0_i32_0, %c0_i32_1 : i32, i32, i32, i32
  }
  func.func @transform_1(%arg0: i32, %arg1: i32) -> (i32, i32) {
    %c0_i32 = arith.constant 0 : i32
    %c0_i32_0 = arith.constant 0 : i32
    %c0_i32_1 = arith.constant 0 : i32
    return %c0_i32, %c0_i32_0 : i32, i32
  }
  func.func @transform_2(%arg0: i32, %arg1: i32) -> (i32, i32) {
    %c0_i32 = arith.constant 0 : i32
    %c0_i32_0 = arith.constant 0 : i32
    %c0_i32_1 = arith.constant 0 : i32
    return %c0_i32, %c0_i32_0 : i32, i32
  }
  func.func @transform_3(%arg0: i32, %arg1: i32) -> (i32, i32, i32) {
    %c0_i32 = arith.constant 0 : i32
    %c0_i32_0 = arith.constant 0 : i32
    %c0_i32_1 = arith.constant 0 : i32
    %c0_i32_2 = arith.constant 0 : i32
    return %c0_i32, %c0_i32_0, %c0_i32_1 : i32, i32, i32
  }
  func.func @transform_4(%arg0: i32, %arg1: i32) -> (i32, i32) {
    %c0_i32 = arith.constant 0 : i32
    %c0_i32_0 = arith.constant 0 : i32
    %c0_i32_1 = arith.constant 0 : i32
    return %c0_i32, %c0_i32_0 : i32, i32
  }
  func.func @transform_5(%arg0: i32, %arg1: i32) -> (i32, i32) {
    %c0_i32 = arith.constant 0 : i32
    %c0_i32_0 = arith.constant 0 : i32
    %c0_i32_1 = arith.constant 0 : i32
    return %c0_i32, %c0_i32_0 : i32, i32
  }
  func.func @transform_6(%arg0: i32, %arg1: i32) -> (i32, i32) {
    %c0_i32 = arith.constant 0 : i32
    %c0_i32_0 = arith.constant 0 : i32
    %c0_i32_1 = arith.constant 0 : i32
    return %c0_i32, %c0_i32_0 : i32, i32
  }
  func.func @transform_7(%arg0: i32, %arg1: i32) -> (i32, i32, i32, i32) {
    %c0_i32 = arith.constant 0 : i32
    %c0_i32_0 = arith.constant 0 : i32
    %c0_i32_1 = arith.constant 0 : i32
    return %arg0, %arg1, %c0_i32, %c0_i32_0 : i32, i32, i32, i32
  }
}

</mosaic_0001>

<bundles_post_ra>
// kernel: tpu_custom_call.1
= control target key start
LH: loop header
LB: loop body
LE: loop exit
PB: predicated region body
PF: predicated region fallthrough
CT: control target
= control target key end

     0   :  { %12 = vsyncpa [#allocation4], 0  ;;  %s5175_s0 = inlined_call_operand.hbm [shape: bf16[2,16,16,16], index: 0, kind: input, shape index: {}]   ;;  %s5176_s1 = inlined_call_operand.vmem [shape: bf16[16,4], index: 1, kind: input, shape index: {}]   ;;  %s5177_s2 = inlined_call_operand.vmem [shape: f32[1,4], index: 2, kind: input, shape index: {}]   ;;  %s5178_s3 = inlined_call_operand.vmem [shape: bf16[3,4,12], index: 3, kind: input, shape index: {}]   ;;  %s5179_s4 = inlined_call_operand.vmem [shape: f32[1,4], index: 4, kind: input, shape index: {}]   ;;  %s5180_s5 = inlined_call_operand.vmem [shape: bf16[4,16], index: 5, kind: input, shape index: {}]   ;;  %s5181_s6 = inlined_call_operand.vmem [shape: f32[1,16], index: 6, kind: input, shape index: {}]   ;;  %s5182_s7 = inlined_call_operand.hbm [shape: bf16[2,16,16,16], index: 7, kind: output, shape index: {}]  }
   0x1   :  { %13 = vsyncpa [#allocation5], 0 }
   0x2   :  { %15 = vsyncpa [#allocation5 + $0x1], 0  ;;  %s4147_s24 = smov 0   ;;  %s4149_s25 = smov 0  }
   0x3   :  { %s4151_s26 = smov 0   ;;  %s4153_s27 = smov 0  }
   0x4   :  { %s4155_s28 = smov 0   ;;  %s4157_s29 = smov 0  }
   0x5 LB: > { %s3293_s30 = sadd.s32 4294967295, %s4096_s29   ;;  %s3294_s8 = sadd.s32 4294967294, %s4096_s29   ;;  %s4096_s29 = sphi %s4157_s29, %s21_s29   ;;  %s4092_s28 = sphi %s4155_s28, %s5236_s28   ;;  %s4088_s27 = sphi %s4153_s27, %s5235_s27   ;;  %s4084_s26 = sphi %s4151_s26, %s5234_s26   ;;  %s4080_s25 = sphi %s4149_s25, %s5233_s25   ;;  %s4076_s24 = sphi %s4147_s24, %s5232_s24  }
   0x6   : > { %s33_s9 = sadd.s32 1, %s4092_s28  ;;  %s40_s10 = sadd.s32 1, %s4084_s26 }
   0x7   : > { %p35_p0 = scmp.ge.s32.totalorder %s33_s9, 2  ;;  %p53_p1 = scmp.ne.s32.totalorder %s4080_s25, %s4076_s24 }
   0x8   : > { %p204_p2 = scmp.ne.s32.totalorder %s4084_s26, %s4080_s25  ;;  %p54_p3 = scmp.eq.s32.totalorder %s3293_s30, 0 }
   0x9   : > { %s5238_s9 = smov (%p35_p0, %s33_s9), 0  ;;  %p205_p4 = scmp.eq.s32.totalorder %s3293_s30, 1 }
   0xa   : > { %s37_s11 = ssub.s32 %s4092_s28, %s5238_s9  ;;  %p211_p5 = scmp.eq.s32.totalorder %s3294_s8, 1 }
   0xb   : > { %p38_p6 = scmp.eq.s32.totalorder %s37_s11, 0  ;;  %p4189_p7 = por %p205_p4, %p204_p2 }
   0xc   : > { %p4193_p8 = por %p211_p5, %p53_p1  ;;  %p3295_p9 = scmp.ge.s32.totalorder %s4096_s29, 1 }
   0xd   : > { %s5187_s12 = scalar_select %p4189_p7, 1, 0 }
   0xe   : > { %s5188_s13 = scalar_select %p4193_p8, 1, 0 }
   0xf   : > { %s4199_s14 = scalar_select %p38_p6, %s4084_s26, %s40_s10  }
  0x10   : > { %p4201_p10 = por %p54_p3, %p53_p1  ;;  %p218_p11 = scmp.lt.s32.totalorder %s4096_s29, 3 }
  0x11   : > { %s3447_s16 = sshll.u32 %s4088_s27, 11  ;;  %s4098_s18 = smov [#allocation3]  }
  0x12   : > { %s5189_s15 = scalar_select %p4201_p10, 1, 0 }
  0x13   : > { %p4207_p12 = pnand %p3295_p9, %p218_p11  ;;  %s233_s19 = sshll.u32 %s4098_s18, 4  ;;  %s4220_s19 = int_to_ptr.vmem [resolvable:$true] %s233_s19 }
  0x14   : > { %s4218_s22 = scalar_lea.hbm %s5175_s0, %s3447_s16  ;;  %s3989_s11 = scalar_lea.hbm %s5175_s0, 4096 }
  0x15   : > { %s5190_s17 = scalar_select %p4207_p12, 1, 0 }
  0x16   : > { %p3899_p13 = pneg %p4207_p12  ;;  %s3984_s30 = scalar_lea.hbm %s4218_s22, 2048 }
  0x17   : > { %p3985_p1 = scmp.ne.s32.totalorder %s4218_s22, %s3984_s30  ;;  %p3990_p5 = scmp.lt.u32.totalorder %s4218_s22, %s5175_s0 }
  0x18   : > { %p4224_p0 = pnand %p3899_p13, %p4201_p10  ;;  %p3991_p6 = scmp.lt.u32.totalorder %s3989_s11, %s3984_s30 }
  0x19   : > { %p3993_p11 = scmp.lt.u32.totalorder %s3984_s30, %s4218_s22 }
  0x1a   : > { %p3986_p2 = pneg %p4224_p0  ;;  %p3992_p9 = por %p3991_p6, %p3990_p5 }
  0x1c   : > { %p3987_p3 = pnand %p3986_p2, %p3985_p1  ;;  %p3994_p13 = por %p3993_p11, %p3992_p9 }
  0x1e   : > { %p3988_p4 = pneg %p3987_p3 }
  0x20   : > { %p3995_p8 = pnand %p3994_p13, %p3988_p4 }
  0x22   : > { %3998 = shalt.err (!%p3995_p8)
}
  0x23   : > { %s3999_s21 = scalar_lea.vmem %s4220_s19, 2048  ;;  %p4007_p10 = scmp.lt.s32.totalorder %s4220_s19, %s4220_s19 }
  0x24   : > { %p4000_p1 = scmp.ne.s32.totalorder %s4220_s19, %s3999_s21  ;;  %p4008_p12 = scmp.lt.s32.totalorder %s3999_s21, %s3999_s21 }
  0x26   : > { %p4002_p3 = pnand %p4000_p1, %p3986_p2  ;;  %p4009_p5 = por %p4008_p12, %p4007_p10 }
  0x28   : > { %p4003_p7 = pneg %p4002_p3 }
  0x2a   : > { %p4010_p6 = pnand %p4009_p5, %p4003_p7 }
  0x2c   : > { %4013 = shalt.err (!%p4010_p6)
}
  0x2d   : > { %s4099_s30 = smov 64   ;;  %s4100_s8 = smov 4  }
  0x2e   : > { %3902 = dma.hbm_to_vmem [thread:$0]  (!%p4224_p0), %s4218_s22, 2048, %s4220_s19, [#allocation4], %s4099_s30, %s4099_s30, %s4100_s8  }
  0x2f   : > { %p5192_p8 = scmp.ne.s32.totalorder %s5190_s17, 0 }
  0x30   : > { %p5193_p4 = scmp.ne.s32.totalorder (!%p5192_p8), %s5189_s15, 0 }
  0x31   : > { %267 = sbr.rel (%p5192_p8) target bundleno = 1121 (0x461), region = 48 }
  0x38   : > { %4067 = dma.done.wait (%p5193_p4), [#allocation4], 2048  }
  0x39   : > { %4069 = vsyncadd (%p5193_p4), [#allocation4], 4294965248  ;;  %v3964_v0 = vld [vmem:[%s5176_s1] sm:$0xff]   ;;  %vm427_vm0 = vcmask 130048   ;;  %v3965_v1 = vld [vmem:[#allocation3] sm:$0xff]   ;;  %vm919_vm1 = vcmask 1041408   ;;  %s5117_s15 = scalar_lea.hbm %s5182_s7, %s3447_s16 }
  0x3a   : > { %3648 = vmatprep.subr.bf16.mxu0 %v3964_v0  ;;  %v3966_v2 = vld [vmem:[#allocation3 + $0x8] sm:$0xff]   ;;  %3650 = vmatprep.mubr.msk.bf16.mxu0 %vm427_vm0, %v3965_v1  ;;  %v3967_v3 = vld [vmem:[#allocation3 + $0x10] sm:$0xff]   ;;  %v3968_v4 = vld [vmem:[#allocation3 + $0x18] sm:$0xff]   ;;  %vm685_vm2 = vcmask 31744   ;;  %v4101_v23 = vmov 0.0|0.0   ;;  %s4102_s10 = smov 124  }
  0x3b   : > { %3649 = vmatpush3.bf16.msra.mxu0 %v3964_v0  ;;  %v3969_v5 = vld [vmem:[#allocation3 + $0x20] sm:$0xff]   ;;  %v3970_v6 = vld [vmem:[#allocation3 + $0x28] sm:$0xff]   ;;  %v3971_v7 = vld [vmem:[#allocation3 + $0x30] sm:$0xff]   ;;  %849 = vst.msk [vmem:[#allocation2] sm:$0xff] %vm685_vm2, %v4101_v23  ;;  %s4103_s11 = smov 120   ;;  %s291_s20 = sand.u32 1, %s4080_s25  }
  0x3c   : > { %v3972_v8 = vld [vmem:[#allocation3 + $0x38] sm:$0xff]   ;;  %v3973_v9 = vld [vmem:[#allocation3 + $0x40] sm:$0xff]   ;;  %v3974_v10 = vld [vmem:[#allocation3 + $0x48] sm:$0xff]   ;;  %850 = vst.msk [vmem:[#allocation2 + $0x88] sm:$0xff] %vm685_vm2, %v4101_v23  ;;  %s3299_s21 = sshll.u32 %s291_s20, 7  ;;  %s5129_s17 = scalar_lea.sflag [#allocation5], %s291_s20 }
  0x3d   : > { %v3975_v11 = vld [vmem:[#allocation3 + $0x50] sm:$0xff]   ;;  %v3976_v12 = vld [vmem:[#allocation3 + $0x58] sm:$0xff]   ;;  %v3977_v13 = vld [vmem:[#allocation3 + $0x60] sm:$0xff]   ;;  %s5023_s30 = scalar_lea.vmem [#allocation6], %s3299_s21  ;;  %p5230_p10 = scmp.ne.s32.totalorder %s5187_s12, 0 }
  0x3e   : > { %3651 = vmatmul.mubr.msk.bf16.vlgmr.msra.gmra.mrb[0].mxu0 %vm427_vm0, %v3966_v2  ;;  %v3978_v14 = vld [vmem:[#allocation3 + $0x68] sm:$0xff]   ;;  %v3979_v15 = vld [vmem:[#allocation3 + $0x70] sm:$0xff]   ;;  %v3980_v16 = vld [vmem:[#allocation3 + $0x78] sm:$0xff]   ;;  %s3212_s8 = sshll.u32 %s5023_s30, 4  ;;  %s4104_s16 = smov [#allocation6]   ;;  %s5121_s8 = int_to_ptr.vmem [resolvable:$true] %s3212_s8 }
  0x3f   : > { %3654 = vmatprep.mubr.msk.bf16.mxu0 %vm427_vm0, %v3967_v3  ;;  %v3342_v17 = vld [vmem:[%s5178_s3 + $0x2] sm:$0x3]  ;;  %v3982_v20 = vld [vmem:[#allocation3] sm:$0xff]   ;;  %v3983_v21 = vld [vmem:[#allocation3 + $0x78] sm:$0xff]   ;;  %s4014_s27 = scalar_lea.vmem %s5121_s8, 2048  ;;  %s4018_s19 = sshll.u32 %s4104_s16, 4  ;;  %s4019_s19 = int_to_ptr.vmem [resolvable:$false] %s4018_s19 }
  0x40   : > { %3890 = vmatprep.subr.msk.bf16.mxu0 %vm919_vm1, %v3342_v17  ;;  %v921_v18 = vsel %vm919_vm1, %v3342_v17, 0  ;;  %v3981_v19 = vld [vmem:[%s5176_s1] sm:$0xff]   ;;  %3684 = vmatprep.mubr.msk.bf16.mxu1 %vm427_vm0, %v3982_v20  ;;  %p4015_p7 = scmp.ne.s32.totalorder %s5121_s8, %s4014_s27  ;;  %s4020_s22 = scalar_lea.vmem %s4019_s19, 4096 }
  0x41   : > { %3689 = vmatpush3.bf16.msra.mxu0 %v921_v18  ;;  %3682 = vmatprep.subr.bf16.mxu1 %v3981_v19  ;;  %v4293_v22 = vld [vmem:[%s5178_s3] sm:$0x3]  ;;  %p4021_p2 = scmp.lt.s32.totalorder %s5121_s8, %s4019_s19  ;;  %p4022_p9 = scmp.lt.s32.totalorder %s4020_s22, %s4014_s27 }
  0x42   : > { %3683 = vmatpush3.bf16.msra.mxu1 %v3981_v19  ;;  %v4302_v24 = vld [vmem:[%s5177_s2] ss:$0 sm:$0xff]  ;;  %p4016_p12 = pnand %p4015_p7, %p5230_p10 }
  0x43   : > { %3891 = vmatprep.subr.msk.bf16.mxu1 %vm919_vm1, %v3342_v17  ;;  %p4023_p11 = por %p4022_p9, %p4021_p2 }
  0x44   : > { %p4017_p0 = pneg %p4016_p12 }
  0x45   : > { %3685 = vmatmul.mubr.msk.bf16.vlgmr.msra.gmra.mrb[0].mxu1 %vm427_vm0, %v3983_v21 }
  0x46   : > { %3655 = vmatmul.mubr.msk.bf16.gmra.mrb[4].mxu0 %vm427_vm0, %v3968_v4  ;;  %3825 = vmatpush3.bf16.msra.mxu1 %v921_v18  ;;  %p4024_p13 = pnand %p4023_p11, %p4017_p0 }
  0x47   : > { %3658 = vmatprep.mubr.msk.bf16.mxu0 %vm427_vm0, %v3969_v5  ;;  %3892 = vmatprep.subr.msk.bf16.mxu1 %vm919_vm1, %v4293_v22 }
  0x4e   : > { %3659 = vmatmul.mubr.msk.bf16.gmra.mrb[8].mxu0 %vm427_vm0, %v3970_v6 }
  0x4f   : > { %3662 = vmatprep.mubr.msk.bf16.mxu0 %vm427_vm0, %v3971_v7 }
  0x56   : > { %3663 = vmatmul.mubr.msk.bf16.gmra.mrb[12].mxu0 %vm427_vm0, %v3972_v8 }
  0x57   : > { %3666 = vmatprep.mubr.msk.bf16.mxu0 %vm427_vm0, %v3973_v9 }
  0x5e   : > { %3667 = vmatmul.mubr.msk.bf16.gmra.mrb[16].mxu0 %vm427_vm0, %v3974_v10 }
  0x5f   : > { %3670 = vmatprep.mubr.msk.bf16.mxu0 %vm427_vm0, %v3975_v11 }
  0x66   : > { %3671 = vmatmul.mubr.msk.bf16.gmra.mrb[20].mxu0 %vm427_vm0, %v3976_v12 }
  0x67   : > { %3674 = vmatprep.mubr.msk.bf16.mxu0 %vm427_vm0, %v3977_v13 }
  0x6e   : > { %3675 = vmatmul.mubr.msk.bf16.gmra.mrb[24].mxu0 %vm427_vm0, %v3978_v14 }
  0x6f   : > { %3678 = vmatprep.mubr.msk.bf16.mxu0 %vm427_vm0, %v3979_v15 }
  0x76   : > { %3679 = vmatmul.mubr.msk.bf16.gmra.mrb[28].mxu0 %vm427_vm0, %v3980_v16 }
 0x111   : > { %v3652_v25 = vpop.f32.mrb[0].mxu0 }
 0x112   : > { %v519_v26 = vadd.f32 %v3652_v25, %v4302_v24  ;;  %v510_v27 = vpop.f32.mrb[1].mxu0 }
 0x113   : > { %v511_v28 = vadd.f32 %v4302_v24, %v510_v27  ;;  %v3653_v29 = vpop.f32.mrb[2].mxu0 }
 0x114   : > { %v522_v30 = vadd.f32 %v3653_v29, %v4302_v24  ;;  %v513_v31 = vpop.f32.mrb[3].mxu0  ;;  %v639_v33 = vmax.f32 %v519_v26, 0.0 }
 0x115   : > { %v514_v32 = vadd.f32 %v4302_v24, %v513_v31  ;;  %v637_v35 = vmax.f32 %v511_v28, 0.0 }
 0x116   : > { %v640_v34 = vmax.f32 %v522_v30, 0.0 }
 0x117   : > { %v638_v36 = vmax.f32 %v514_v32, 0.0 }
 0x118   : > { %v670_v37 = vpack.c.bf16 %v640_v34, %v639_v33 }
 0x119   : > { %v669_v38 = vpack.c.bf16 %v638_v36, %v637_v35  ;;  %v3656_v39 = vpop.f32.mrb[4].mxu0 }
 0x11a   : > { %687 = vst.msk [vmem:[#allocation2 + $0x10] sm:$0xff] %vm685_vm2, %v670_v37  ;;  %v535_v40 = vadd.f32 %v3656_v39, %v4302_v24  ;;  %v526_v41 = vpop.f32.mrb[5].mxu0 }
 0x11b   : > { %686 = vst.msk [vmem:[#allocation2 + $0x8] sm:$0xff] %vm685_vm2, %v669_v38  ;;  %v527_v42 = vadd.f32 %v4302_v24, %v526_v41  ;;  %v3657_v43 = vpop.f32.mrb[6].mxu0 }
 0x11c   : > { %v538_v44 = vadd.f32 %v3657_v43, %v4302_v24  ;;  %v529_v45 = vpop.f32.mrb[7].mxu0  ;;  %v643_v47 = vmax.f32 %v535_v40, 0.0 }
 0x11d   : > { %v530_v46 = vadd.f32 %v4302_v24, %v529_v45  ;;  %v641_v49 = vmax.f32 %v527_v42, 0.0 }
 0x11e   : > { %v644_v48 = vmax.f32 %v538_v44, 0.0 }
 0x11f   : > { %v642_v50 = vmax.f32 %v530_v46, 0.0 }
 0x120   : > { %v672_v51 = vpack.c.bf16 %v644_v48, %v643_v47 }
 0x121   : > { %v671_v52 = vpack.c.bf16 %v642_v50, %v641_v49  ;;  %v3660_v53 = vpop.f32.mrb[8].mxu0  ;;  %v4322_v59 = vld [vmem:[#allocation2 + $0x10] sm:$0xff] }
 0x122   : > { %689 = vst.msk [vmem:[#allocation2 + $0x20] sm:$0xff] %vm685_vm2, %v672_v51  ;;  %v551_v54 = vadd.f32 %v3660_v53, %v4302_v24  ;;  %v542_v55 = vpop.f32.mrb[9].mxu0  ;;  %v4316_v56 = vld [vmem:[#allocation2 + $0x8] sm:$0xff] }
 0x123   : > { %688 = vst.msk [vmem:[#allocation2 + $0x18] sm:$0xff] %vm685_vm2, %v671_v52  ;;  %v543_v57 = vadd.f32 %v4302_v24, %v542_v55  ;;  %v3661_v58 = vpop.f32.mrb[10].mxu0  ;;  %3690 = vmatprep.mubr.msk.bf16.mxu0 %vm685_vm2, %v4316_v56 }
 0x124   : > { %v554_v60 = vadd.f32 %v3661_v58, %v4302_v24  ;;  %v545_v61 = vpop.f32.mrb[11].mxu0  ;;  %3691 = vmatmul.mubr.msk.bf16.vlgmr.msra.gmra.mrb[32].mxu0 %vm685_vm2, %v4322_v59  ;;  %v647_v63 = vmax.f32 %v551_v54, 0.0 }
 0x125   : > { %v546_v62 = vadd.f32 %v4302_v24, %v545_v61  ;;  %v645_v1 = vmax.f32 %v543_v57, 0.0  ;;  %v1088_v61 = vsel %vm919_vm1, %v4293_v22, 0 }
 0x126   : > { %v648_v0 = vmax.f32 %v554_v60, 0.0 }
 0x127   : > { %v646_v2 = vmax.f32 %v546_v62, 0.0 }
 0x128   : > { %v674_v3 = vpack.c.bf16 %v648_v0, %v647_v63 }
 0x129   : > { %v673_v4 = vpack.c.bf16 %v646_v2, %v645_v1  ;;  %v3664_v5 = vpop.f32.mrb[12].mxu0  ;;  %v4336_v11 = vld [vmem:[#allocation2 + $0x20] sm:$0xff] }
 0x12a   : > { %691 = vst.msk [vmem:[#allocation2 + $0x30] sm:$0xff] %vm685_vm2, %v674_v3  ;;  %v567_v6 = vadd.f32 %v3664_v5, %v4302_v24  ;;  %v558_v7 = vpop.f32.mrb[13].mxu0  ;;  %v4330_v8 = vld [vmem:[#allocation2 + $0x18] sm:$0xff]  ;;  %v3375_v1 = vld [vmem:[%s5178_s3 + $0x4] sm:$0x3] }
 0x12b   : > { %690 = vst.msk [vmem:[#allocation2 + $0x28] sm:$0xff] %vm685_vm2, %v673_v4  ;;  %v559_v9 = vadd.f32 %v4302_v24, %v558_v7  ;;  %v3665_v10 = vpop.f32.mrb[14].mxu0  ;;  %3694 = vmatprep.mubr.msk.bf16.mxu0 %vm685_vm2, %v4330_v8 }
 0x12c   : > { %v570_v12 = vadd.f32 %v3665_v10, %v4302_v24  ;;  %v561_v13 = vpop.f32.mrb[15].mxu0  ;;  %3695 = vmatmul.mubr.msk.bf16.gmra.mrb[36].mxu0 %vm685_vm2, %v4336_v11  ;;  %v651_v15 = vmax.f32 %v567_v6, 0.0 }
 0x12d   : > { %v562_v14 = vadd.f32 %v4302_v24, %v561_v13  ;;  %v649_v17 = vmax.f32 %v559_v9, 0.0 }
 0x12e   : > { %v652_v16 = vmax.f32 %v570_v12, 0.0 }
 0x12f   : > { %v650_v18 = vmax.f32 %v562_v14, 0.0 }
 0x130   : > { %v676_v19 = vpack.c.bf16 %v652_v16, %v651_v15 }
 0x131   : > { %v675_v20 = vpack.c.bf16 %v650_v18, %v649_v17  ;;  %v3668_v21 = vpop.f32.mrb[16].mxu0  ;;  %v4350_v29 = vld [vmem:[#allocation2 + $0x30] sm:$0xff] }
 0x132   : > { %693 = vst.msk [vmem:[#allocation2 + $0x40] sm:$0xff] %vm685_vm2, %v676_v19  ;;  %v583_v23 = vadd.f32 %v3668_v21, %v4302_v24  ;;  %v574_v25 = vpop.f32.mrb[17].mxu0  ;;  %v4344_v26 = vld [vmem:[#allocation2 + $0x28] sm:$0xff] }
 0x133   : > { %692 = vst.msk [vmem:[#allocation2 + $0x38] sm:$0xff] %vm685_vm2, %v675_v20  ;;  %v575_v27 = vadd.f32 %v4302_v24, %v574_v25  ;;  %v3669_v28 = vpop.f32.mrb[18].mxu0  ;;  %3698 = vmatprep.mubr.msk.bf16.mxu0 %vm685_vm2, %v4344_v26 }
 0x134   : > { %v586_v30 = vadd.f32 %v3669_v28, %v4302_v24  ;;  %v577_v31 = vpop.f32.mrb[19].mxu0  ;;  %3699 = vmatmul.mubr.msk.bf16.gmra.mrb[40].mxu0 %vm685_vm2, %v4350_v29  ;;  %v655_v33 = vmax.f32 %v583_v23, 0.0 }
 0x135   : > { %v578_v32 = vadd.f32 %v4302_v24, %v577_v31  ;;  %v653_v35 = vmax.f32 %v575_v27, 0.0 }
 0x136   : > { %v656_v34 = vmax.f32 %v586_v30, 0.0 }
 0x137   : > { %v654_v36 = vmax.f32 %v578_v32, 0.0 }
 0x138   : > { %v678_v37 = vpack.c.bf16 %v656_v34, %v655_v33 }
 0x139   : > { %v677_v38 = vpack.c.bf16 %v654_v36, %v653_v35  ;;  %v3672_v39 = vpop.f32.mrb[20].mxu0  ;;  %v4364_v45 = vld [vmem:[#allocation2 + $0x40] sm:$0xff]  ;;  %v1318_v36 = vsel %vm919_vm1, %v3375_v1, 0 }
 0x13a   : > { %695 = vst.msk [vmem:[#allocation2 + $0x50] sm:$0xff] %vm685_vm2, %v678_v37  ;;  %v599_v40 = vadd.f32 %v3672_v39, %v4302_v24  ;;  %v590_v41 = vpop.f32.mrb[21].mxu0  ;;  %v4358_v42 = vld [vmem:[#allocation2 + $0x38] sm:$0xff]  ;;  %v851_v35 = vld [vmem:[#allocation2] sm:$0xff] }
 0x13b   : > { %694 = vst.msk [vmem:[#allocation2 + $0x48] sm:$0xff] %vm685_vm2, %v677_v38  ;;  %v591_v43 = vadd.f32 %v4302_v24, %v590_v41  ;;  %v3673_v44 = vpop.f32.mrb[22].mxu0  ;;  %3702 = vmatprep.mubr.msk.bf16.mxu0 %vm685_vm2, %v4358_v42 }
 0x13c   : > { %v602_v46 = vadd.f32 %v3673_v44, %v4302_v24  ;;  %v593_v47 = vpop.f32.mrb[23].mxu0  ;;  %3703 = vmatmul.mubr.msk.bf16.gmra.mrb[44].mxu0 %vm685_vm2, %v4364_v45  ;;  %v659_v49 = vmax.f32 %v599_v40, 0.0 }
 0x13d   : > { %v594_v48 = vadd.f32 %v4302_v24, %v593_v47  ;;  %v657_v51 = vmax.f32 %v591_v43, 0.0 }
 0x13e   : > { %v660_v50 = vmax.f32 %v602_v46, 0.0 }
 0x13f   : > { %v658_v52 = vmax.f32 %v594_v48, 0.0 }
 0x140   : > { %v680_v53 = vpack.c.bf16 %v660_v50, %v659_v49 }
 0x141   : > { %v679_v54 = vpack.c.bf16 %v658_v52, %v657_v51  ;;  %v3676_v55 = vpop.f32.mrb[24].mxu0  ;;  %v4380_v0 = vld [vmem:[#allocation2 + $0x50] sm:$0xff]  ;;  %v802_v52 = vlaneseq }
 0x142   : > { %697 = vst.msk [vmem:[#allocation2 + $0x60] sm:$0xff] %vm685_vm2, %v680_v53  ;;  %v615_v57 = vadd.f32 %v3676_v55, %v4302_v24  ;;  %v606_v58 = vpop.f32.mrb[25].mxu0  ;;  %v4372_v60 = vld [vmem:[#allocation2 + $0x48] sm:$0xff] }
 0x143   : > { %696 = vst.msk [vmem:[#allocation2 + $0x58] sm:$0xff] %vm685_vm2, %v679_v54  ;;  %v607_v62 = vadd.f32 %v4302_v24, %v606_v58  ;;  %v3677_v63 = vpop.f32.mrb[26].mxu0  ;;  %3706 = vmatprep.mubr.msk.bf16.mxu1 %vm685_vm2, %v4372_v60 }
 0x144   : > { %v618_v2 = vadd.f32 %v3677_v63, %v4302_v24  ;;  %v609_v3 = vpop.f32.mrb[27].mxu0  ;;  %3707 = vmatmul.mubr.msk.bf16.vlgmr.msra.gmra.mrb[4].mxu1 %vm685_vm2, %v4380_v0  ;;  %v663_v4 = vmax.f32 %v615_v57, 0.0 }
 0x145   : > { %v610_v22 = vadd.f32 %v4302_v24, %v609_v3  ;;  %3723 = vmatpush3.bf16.msra.mxu1 %v1088_v61  ;;  %v661_v6 = vmax.f32 %v607_v62, 0.0 }
 0x146   : > { %v664_v5 = vmax.f32 %v618_v2, 0.0  ;;  %3893 = vmatprep.subr.msk.bf16.mxu1 %vm919_vm1, %v3375_v1 }
 0x147   : > { %v662_v7 = vmax.f32 %v610_v22, 0.0 }
 0x148   : > { %v682_v9 = vpack.c.bf16 %v664_v5, %v663_v4 }
 0x149   : > { %v681_v10 = vpack.c.bf16 %v662_v7, %v661_v6  ;;  %v3680_v12 = vpop.f32.mrb[28].mxu0  ;;  %v863_v18 = vld [vmem:[#allocation2 + $0x60] sm:$0xff] }
 0x14a   : > { %699 = vst.msk [vmem:[#allocation2 + $0x70] sm:$0xff] %vm685_vm2, %v682_v9  ;;  %v631_v13 = vadd.f32 %v3680_v12, %v4302_v24  ;;  %v622_v14 = vpop.f32.mrb[29].mxu0  ;;  %v862_v15 = vld [vmem:[#allocation2 + $0x58] sm:$0xff] }
 0x14b   : > { %698 = vst.msk [vmem:[#allocation2 + $0x68] sm:$0xff] %vm685_vm2, %v681_v10  ;;  %v623_v16 = vadd.f32 %v4302_v24, %v622_v14  ;;  %v3681_v17 = vpop.f32.mrb[30].mxu0  ;;  %3710 = vmatprep.mubr.msk.bf16.mxu1 %vm685_vm2, %v862_v15 }
 0x14c   : > { %v634_v19 = vadd.f32 %v3681_v17, %v4302_v24  ;;  %v625_v20 = vpop.f32.mrb[31].mxu0  ;;  %3711 = vmatmul.mubr.msk.bf16.gmra.mrb[8].mxu1 %vm685_vm2, %v863_v18  ;;  %v667_v23 = vmax.f32 %v631_v13, 0.0 }
 0x14d   : > { %v626_v21 = vadd.f32 %v4302_v24, %v625_v20  ;;  %v665_v27 = vmax.f32 %v623_v16, 0.0 }
 0x14e   : > { %v668_v25 = vmax.f32 %v634_v19, 0.0 }
 0x14f   : > { %v666_v28 = vmax.f32 %v626_v21, 0.0 }
 0x150   : > { %v684_v30 = vpack.c.bf16 %v668_v25, %v667_v23 }
 0x151   : > { %v683_v31 = vpack.c.bf16 %v666_v28, %v665_v27  ;;  %v865_v33 = vld [vmem:[#allocation2 + $0x70] sm:$0xff] }
 0x152   : > { %701 = vst.msk [vmem:[#allocation2 + $0x80] sm:$0xff] %vm685_vm2, %v684_v30  ;;  %v864_v32 = vld [vmem:[#allocation2 + $0x68] sm:$0xff] }
 0x153   : > { %700 = vst.msk [vmem:[#allocation2 + $0x78] sm:$0xff] %vm685_vm2, %v683_v31  ;;  %3714 = vmatprep.mubr.msk.bf16.mxu1 %vm685_vm2, %v864_v32  ;;  %v2686_v31 = vld [vmem:[%s5180_s5] sm:$0x3] }
 0x154   : > { %3715 = vmatmul.mubr.msk.bf16.gmra.mrb[12].mxu1 %vm685_vm2, %v865_v33  ;;  %3894 = vmatprep.subr.msk.bf16.mxu0 %vm919_vm1, %v2686_v31 }
 0x159   : > { %v868_v24 = vld [vmem:[#allocation2 + $0x80] sm:$0xff] }
 0x15a   : > { %v866_v34 = vld [vmem:[#allocation2 + $0x78] sm:$0xff] }
 0x15b   : > { %3718 = vmatprep.mubr.msk.bf16.mxu1 %vm685_vm2, %v866_v34 }
 0x15c   : > { %3719 = vmatmul.mubr.msk.bf16.gmra.mrb[16].mxu1 %vm685_vm2, %v868_v24 }
 0x15d   : > { %3724 = vmatprep.mubr.msk.bf16.mxu1 %vm685_vm2, %v851_v35 }
 0x164   : > { %3725 = vmatmul.mubr.msk.bf16.vlgmr.msra.gmra.mrb[20].mxu1 %vm685_vm2, %v4316_v56  ;;  %v3686_v56 = vpop.f32.mrb[0].mxu1 }
 0x165   : > { %3757 = vmatpush3.bf16.msra.mxu1 %v1318_v36  ;;  %3728 = vmatprep.mubr.msk.bf16.mxu1 %vm685_vm2, %v4322_v59  ;;  %v783_v37 = vpop.f32.mrb[1].mxu1 }
 0x166   : > { %v3687_v38 = vpop.f32.mrb[2].mxu1 }
 0x167   : > { %v786_v39 = vpop.f32.mrb[3].mxu1 }
 0x16c   : > { %3729 = vmatmul.mubr.msk.bf16.gmra.mrb[24].mxu1 %vm685_vm2, %v4330_v8 }
 0x16d   : > { %3732 = vmatprep.mubr.msk.bf16.mxu1 %vm685_vm2, %v4336_v11 }
 0x174   : > { %3733 = vmatmul.mubr.msk.bf16.gmra.mrb[28].mxu1 %vm685_vm2, %v4344_v26 }
 0x175   : > { %3736 = vmatprep.mubr.msk.bf16.mxu1 %vm685_vm2, %v4350_v29 }
 0x17c   : > { %3737 = vmatmul.mubr.msk.bf16.gmra.mrb[32].mxu1 %vm685_vm2, %v4358_v42 }
 0x17d   : > { %3740 = vmatprep.mubr.msk.bf16.mxu1 %vm685_vm2, %v4364_v45 }
 0x184   : > { %3741 = vmatmul.mubr.msk.bf16.gmra.mrb[4].mxu1 %vm685_vm2, %v4372_v60 }
 0x185   : > { %3744 = vmatprep.mubr.msk.bf16.mxu1 %vm685_vm2, %v4380_v0 }
 0x18c   : > { %3745 = vmatmul.mubr.msk.bf16.gmra.mrb[8].mxu1 %vm685_vm2, %v862_v15 }
 0x18d   : > { %3748 = vmatprep.mubr.msk.bf16.mxu1 %vm685_vm2, %v863_v18 }
 0x194   : > { %3749 = vmatmul.mubr.msk.bf16.gmra.mrb[12].mxu1 %vm685_vm2, %v864_v32 }
 0x195   : > { %3752 = vmatprep.mubr.msk.bf16.mxu1 %vm685_vm2, %v865_v33 }
 0x19c   : > { %3753 = vmatmul.mubr.msk.bf16.gmra.mrb[16].mxu1 %vm685_vm2, %v866_v34 }
 0x19d   : > { %3758 = vmatprep.mubr.msk.bf16.mxu1 %vm685_vm2, %v4322_v59  ;;  %v1266_v59 = vld [vmem:[#allocation2 + $0x88] sm:$0xff] }
 0x1a4   : > { %3759 = vmatmul.mubr.msk.bf16.vlgmr.msra.gmra.mrb[20].mxu1 %vm685_vm2, %v4330_v8 }
 0x1a5   : > { %3762 = vmatprep.mubr.msk.bf16.mxu1 %vm685_vm2, %v4336_v11 }
 0x1ac   : > { %3763 = vmatmul.mubr.msk.bf16.gmra.mrb[24].mxu1 %vm685_vm2, %v4344_v26 }
 0x1ad   : > { %3766 = vmatprep.mubr.msk.bf16.mxu1 %vm685_vm2, %v4350_v29 }
 0x1b4   : > { %3767 = vmatmul.mubr.msk.bf16.gmra.mrb[28].mxu1 %vm685_vm2, %v4358_v42 }
 0x1b5   : > { %3770 = vmatprep.mubr.msk.bf16.mxu1 %vm685_vm2, %v4364_v45 }
 0x1bc   : > { %3771 = vmatmul.mubr.msk.bf16.gmra.mrb[32].mxu1 %vm685_vm2, %v4372_v60  ;;  %v4466_v60 = vshrl.u32 %v802_v52, 7 }
 0x1bd   : > { %3774 = vmatprep.mubr.msk.bf16.mxu1 %vm685_vm2, %v4380_v0 }
 0x1be   : > { %vm1989_vm3 = vcmp.lt.s32.totalorder %v4466_v60, 1  ;;  %vm2310_vm5 = vcmp.lt.s32.totalorder %v4466_v60, 7 }
 0x1c4   : > { %3775 = vmatmul.mubr.msk.bf16.gmra.mrb[4].mxu1 %vm685_vm2, %v862_v15 }
 0x1c5   : > { %3778 = vmatprep.mubr.msk.bf16.mxu1 %vm685_vm2, %v863_v18 }
 0x1cc   : > { %3779 = vmatmul.mubr.msk.bf16.gmra.mrb[8].mxu1 %vm685_vm2, %v864_v32 }
 0x1cd   : > { %3782 = vmatprep.mubr.msk.bf16.mxu1 %vm685_vm2, %v865_v33 }
 0x1d4   : > { %3783 = vmatmul.mubr.msk.bf16.gmra.mrb[12].mxu1 %vm685_vm2, %v866_v34  ;;  %v2743_v34 = vsel %vm919_vm1, %v2686_v31, 0 }
 0x1d5   : > { %3786 = vmatprep.mubr.msk.bf16.mxu1 %vm685_vm2, %v868_v24  ;;  %3791 = vmatpush3.bf16.msra.mxu0 %v2743_v34 }
 0x1dc   : > { %3787 = vmatmul.mubr.msk.bf16.gmra.mrb[16].mxu1 %vm685_vm2, %v1266_v59 }
 0x1f7   : > { %v3692_v8 = vpop.f32.mrb[32].mxu0 }
 0x1f8   : > { %v957_v11 = vpop.f32.mrb[33].mxu0 }
 0x1f9   : > { %v3693_v26 = vpop.f32.mrb[34].mxu0 }
 0x1fa   : > { %v960_v29 = vpop.f32.mrb[35].mxu0 }
 0x1ff   : > { %v3696_v40 = vpop.f32.mrb[36].mxu0 }
 0x200   : > { %v973_v41 = vpop.f32.mrb[37].mxu0 }
 0x201   : > { %v3697_v42 = vpop.f32.mrb[38].mxu0 }
 0x202   : > { %v976_v43 = vpop.f32.mrb[39].mxu0 }
 0x207   : > { %v3700_v44 = vpop.f32.mrb[40].mxu0 }
 0x208   : > { %v989_v45 = vpop.f32.mrb[41].mxu0 }
 0x209   : > { %v3701_v46 = vpop.f32.mrb[42].mxu0 }
 0x20a   : > { %v992_v47 = vpop.f32.mrb[43].mxu0 }
 0x20f   : > { %v4456_v48 = vpop.f32.mrb[44].mxu0 }
 0x210   : > { %v4458_v49 = vpop.f32.mrb[45].mxu0 }
 0x211   : > { %v4460_v50 = vpop.f32.mrb[46].mxu0 }
 0x212   : > { %v4462_v51 = vpop.f32.mrb[47].mxu0 }
 0x277   : > { %v3760_v53 = vpop.f32.mrb[20].mxu1 }
 0x278   : > { %v3826_v54 = vadd.f32 %v3760_v53, %v3692_v8  ;;  %v1354_v55 = vpop.f32.mrb[21].mxu1 }
 0x279   : > { %v4464_v57 = vadd.f32 %v1354_v55, %v957_v11  ;;  %v3761_v58 = vpop.f32.mrb[22].mxu1 }
 0x27a   : > { %v3828_v61 = vadd.f32 %v3761_v58, %v3693_v26  ;;  %v1357_v62 = vpop.f32.mrb[23].mxu1  ;;  %2443 = vrot.lane.b32.xlu1 %v3826_v54, %s4102_s10  ;;  %2186 = vrot.lane.b32.xlu0 %v3826_v54, %s4103_s11  ;;  %v1959_v0 = vrot.slane %v3826_v54, 7 }
 0x27b   : > { %v3829_v63 = vadd.f32 %v1357_v62, %v960_v29  ;;  %v1957_v2 = vrot.slane %v4464_v57, 7 }
 0x27c   : > { %v1960_v1 = vrot.slane %v3828_v61, 7 }
 0x27d   : > { %v1958_v3 = vrot.slane %v3829_v63, 7 }
 0x27e   : > { %2182 = vrot.lane.b32.xlu1 %v4464_v57, %s4103_s11  ;;  %2445 = vrot.lane.b32.xlu0 %v3828_v61, %s4102_s10  ;;  %v4477_v22 = vsel %vm1989_vm3, %v1959_v0, %v1960_v1 }
 0x27f   : > { %v3764_v4 = vpop.f32.mrb[24].mxu1  ;;  %v4481_v5 = vsel %vm1989_vm3, %v1958_v3, %v1959_v0  ;;  %v4487_v6 = vsel %vm1989_vm3, %v1957_v2, %v1958_v3 }
 0x280   : > { %v3830_v7 = vadd.f32 %v3764_v4, %v3696_v40  ;;  %v1370_v9 = vpop.f32.mrb[25].mxu1 }
 0x281   : > { %v3831_v10 = vadd.f32 %v1370_v9, %v973_v41  ;;  %v3765_v12 = vpop.f32.mrb[26].mxu1 }
 0x282   : > { %v3832_v13 = vadd.f32 %v3765_v12, %v3697_v42  ;;  %v1373_v14 = vpop.f32.mrb[27].mxu1  ;;  %2439 = vrot.lane.b32.xlu1 %v4464_v57, %s4102_s10  ;;  %2184 = vrot.lane.b32.xlu0 %v3829_v63, %s4103_s11  ;;  %v1963_v17 = vrot.slane %v3830_v7, 7 }
 0x283   : > { %v1961_v15 = vrot.slane %v3831_v10, 7  ;;  %v3833_v16 = vadd.f32 %v1373_v14, %v976_v43 }
 0x284   : > { %v1964_v18 = vrot.slane %v3832_v13, 7 }
 0x285   : > { %v1962_v19 = vrot.slane %v3833_v16, 7  ;;  %v4494_v20 = vsel %vm1989_vm3, %v1960_v1, %v1961_v15 }
 0x286   : > { %2188 = vrot.lane.b32.xlu1 %v3828_v61, %s4103_s11  ;;  %2441 = vrot.lane.b32.xlu0 %v3829_v63, %s4102_s10  ;;  %v4500_v21 = vsel %vm1989_vm3, %v1963_v17, %v1964_v18 }
 0x287   : > { %v3768_v23 = vpop.f32.mrb[28].mxu1  ;;  %v4504_v25 = vsel %vm1989_vm3, %v1962_v19, %v1963_v17  ;;  %v4508_v27 = vsel %vm1989_vm3, %v1961_v15, %v1962_v19 }
 0x288   : > { %v3834_v28 = vadd.f32 %v3768_v23, %v3700_v44  ;;  %v1386_v30 = vpop.f32.mrb[29].mxu1 }
 0x289   : > { %v3835_v32 = vadd.f32 %v1386_v30, %v989_v45  ;;  %v3769_v33 = vpop.f32.mrb[30].mxu1 }
 0x28a   : > { %v3836_v35 = vadd.f32 %v3769_v33, %v3701_v46  ;;  %v1389_v24 = vpop.f32.mrb[31].mxu1  ;;  %2451 = vrot.lane.b32.xlu1 %v3830_v7, %s4102_s10  ;;  %2194 = vrot.lane.b32.xlu0 %v3830_v7, %s4103_s11  ;;  %v1967_v37 = vrot.slane %v3834_v28, 7 }
 0x28b   : > { %v1965_v36 = vrot.slane %v3835_v32, 7  ;;  %v3837_v56 = vadd.f32 %v1389_v24, %v992_v47 }
 0x28c   : > { %v1968_v38 = vrot.slane %v3836_v35, 7 }
 0x28d   : > { %v1966_v39 = vrot.slane %v3837_v56, 7  ;;  %v4519_v59 = vsel %vm1989_vm3, %v1964_v18, %v1965_v36 }
 0x28e   : > { %2447 = vrot.lane.b32.xlu1 %v3831_v10, %s4102_s10  ;;  %2190 = vrot.lane.b32.xlu0 %v3831_v10, %s4103_s11  ;;  %v4525_v8 = vsel %vm1989_vm3, %v1967_v37, %v1968_v38 }
 0x28f   : > { %v3772_v11 = vpop.f32.mrb[32].mxu1  ;;  %v4529_v26 = vsel %vm1989_vm3, %v1966_v39, %v1967_v37  ;;  %v4533_v29 = vsel %vm1989_vm3, %v1965_v36, %v1966_v39 }
 0x290   : > { %v3838_v40 = vadd.f32 %v3772_v11, %v4456_v48  ;;  %v1402_v41 = vpop.f32.mrb[33].mxu1 }
 0x291   : > { %v4537_v42 = vadd.f32 %v1402_v41, %v4458_v49  ;;  %v3773_v43 = vpop.f32.mrb[34].mxu1 }
 0x292   : > { %v4540_v44 = vadd.f32 %v3773_v43, %v4460_v50  ;;  %v1405_v45 = vpop.f32.mrb[35].mxu1  ;;  %2453 = vrot.lane.b32.xlu0 %v3832_v13, %s4102_s10  ;;  %2196 = vrot.lane.b32.xlu1 %v3832_v13, %s4103_s11  ;;  %v1971_v52 = vrot.slane %v3838_v40, 7 }
 0x293   : > { %v1969_v46 = vrot.slane %v4537_v42, 7  ;;  %v4546_v47 = vadd.f32 %v1405_v45, %v4462_v51 }
 0x294   : > { %v1972_v48 = vrot.slane %v4540_v44, 7 }
 0x295   : > { %v1970_v49 = vrot.slane %v4546_v47, 7  ;;  %v4552_v53 = vsel %vm1989_vm3, %v1968_v38, %v1969_v46 }
 0x296   : > { %2449 = vrot.lane.b32.xlu0 %v3833_v16, %s4102_s10  ;;  %2192 = vrot.lane.b32.xlu1 %v3833_v16, %s4103_s11  ;;  %v4558_v50 = vsel %vm1989_vm3, %v1971_v52, %v1972_v48 }
 0x297   : > { %v4560_v54 = vpop.f32.mrb[4].mxu1  ;;  %v4564_v51 = vsel %vm1989_vm3, %v1970_v49, %v1971_v52  ;;  %v4568_v55 = vsel %vm1989_vm3, %v1969_v46, %v1970_v49 }
 0x298   : > { %v4570_v58 = vpop.f32.mrb[5].mxu1  ;;  %v1975_v63 = vrot.slane %v4560_v54, 7 }
 0x299   : > { %v1973_v61 = vrot.slane %v4570_v58, 7  ;;  %v4573_v62 = vpop.f32.mrb[6].mxu1 }
 0x29a   : > { %v1976_v0 = vrot.slane %v4573_v62, 7  ;;  %v4577_v1 = vpop.f32.mrb[7].mxu1  ;;  %2459 = vrot.lane.b32.xlu1 %v3834_v28, %s4102_s10  ;;  %2202 = vrot.lane.b32.xlu0 %v3834_v28, %s4103_s11 }
 0x29b   : > { %v1974_v3 = vrot.slane %v4577_v1, 7  ;;  %v4584_v4 = vsel %vm1989_vm3, %v1972_v48, %v1973_v61 }
 0x29c   : > { %v4588_v7 = vsel %vm1989_vm3, %v1975_v63, %v1976_v0 }
 0x29d   : > { %v4592_v9 = vsel %vm1989_vm3, %v1974_v3, %v1975_v63  ;;  %v4596_v10 = vsel %vm1989_vm3, %v1973_v61, %v1974_v3 }
 0x29e   : > { %2455 = vrot.lane.b32.xlu1 %v3835_v32, %s4102_s10  ;;  %2198 = vrot.lane.b32.xlu0 %v3835_v32, %s4103_s11 }
 0x29f   : > { %v3780_v12 = vpop.f32.mrb[8].mxu1 }
 0x2a0   : > { %v1434_v13 = vpop.f32.mrb[9].mxu1  ;;  %v1979_v16 = vrot.slane %v3780_v12, 7 }
 0x2a1   : > { %v1977_v14 = vrot.slane %v1434_v13, 7  ;;  %v3781_v15 = vpop.f32.mrb[10].mxu1 }
 0x2a2   : > { %v1980_v17 = vrot.slane %v3781_v15, 7  ;;  %v1437_v18 = vpop.f32.mrb[11].mxu1  ;;  %2461 = vrot.lane.b32.xlu0 %v3836_v35, %s4102_s10  ;;  %2204 = vrot.lane.b32.xlu1 %v3836_v35, %s4103_s11 }
 0x2a3   : > { %v1978_v19 = vrot.slane %v1437_v18, 7  ;;  %v4604_v23 = vsel %vm1989_vm3, %v1976_v0, %v1977_v14 }
 0x2a4   : > { %v4608_v28 = vsel %vm1989_vm3, %v1979_v16, %v1980_v17 }
 0x2a5   : > { %v4612_v30 = vsel %vm1989_vm3, %v1978_v19, %v1979_v16  ;;  %v4616_v31 = vsel %vm1989_vm3, %v1977_v14, %v1978_v19 }
 0x2a6   : > { %2457 = vrot.lane.b32.xlu0 %v3837_v56, %s4102_s10  ;;  %2200 = vrot.lane.b32.xlu1 %v3837_v56, %s4103_s11 }
 0x2a7   : > { %v3784_v32 = vpop.f32.mrb[12].mxu1 }
 0x2a8   : > { %v1450_v33 = vpop.f32.mrb[13].mxu1  ;;  %v1983_v24 = vrot.slane %v3784_v32, 7 }
 0x2a9   : > { %v1981_v34 = vrot.slane %v1450_v33, 7  ;;  %v3785_v35 = vpop.f32.mrb[14].mxu1 }
 0x2aa   : > { %v1984_v36 = vrot.slane %v3785_v35, 7  ;;  %v1453_v37 = vpop.f32.mrb[15].mxu1  ;;  %2467 = vrot.lane.b32.xlu1 %v3838_v40, %s4102_s10  ;;  %2210 = vrot.lane.b32.xlu0 %v3838_v40, %s4103_s11 }
 0x2ab   : > { %v1982_v38 = vrot.slane %v1453_v37, 7  ;;  %v4624_v39 = vsel %vm1989_vm3, %v1980_v17, %v1981_v34 }
 0x2ac   : > { %v4628_v11 = vsel %vm1989_vm3, %v1983_v24, %v1984_v36 }
 0x2ad   : > { %v4632_v56 = vsel %vm1989_vm3, %v1982_v38, %v1983_v24  ;;  %v4636_v41 = vsel %vm1989_vm3, %v1981_v34, %v1982_v38 }
 0x2ae   : > { %2463 = vrot.lane.b32.xlu1 %v4537_v42, %s4102_s10  ;;  %2206 = vrot.lane.b32.xlu0 %v4537_v42, %s4103_s11 }
 0x2af   : > { %v4642_v40 = vpop.f32.mrb[16].mxu1 }
 0x2b0   : > { %v1466_v43 = vpop.f32.mrb[17].mxu1  ;;  %v1987_v52 = vrot.slane %v4642_v40, 7 }
 0x2b1   : > { %v1985_v45 = vrot.slane %v1466_v43, 7  ;;  %v3789_v46 = vpop.f32.mrb[18].mxu1 }
 0x2b2   : > { %v1988_v48 = vrot.slane %v3789_v46, 7  ;;  %v1469_v49 = vpop.f32.mrb[19].mxu1  ;;  %2469 = vrot.lane.b32.xlu0 %v4540_v44, %s4102_s10  ;;  %2212 = vrot.lane.b32.xlu1 %v4540_v44, %s4103_s11 }
 0x2b3   : > { %v1986_v61 = vrot.slane %v1469_v49, 7  ;;  %v4651_v63 = vsel %vm1989_vm3, %v1984_v36, %v1985_v45 }
 0x2b4   : > { %v2021_v42 = vsel %vm1989_vm3, %v1988_v48, %v1957_v2  ;;  %v4659_v0 = vsel %vm1989_vm3, %v1987_v52, %v1988_v48 }
 0x2b5   : > { %v4663_v3 = vsel %vm1989_vm3, %v1985_v45, %v1986_v61  ;;  %v4667_v44 = vsel %vm1989_vm3, %v1986_v61, %v1987_v52  ;;  %v1513_v61 = vadd.s32 32, %v4466_v60 }
 0x2b6   : > { %2465 = vrot.lane.b32.xlu0 %v4546_v47, %s4102_s10  ;;  %2208 = vrot.lane.b32.xlu1 %v4546_v47, %s4103_s11  ;;  %v1545_v47 = vand.u32 15, %v4466_v60 }
 0x2b8   : > { %vm1925_vm4 = vcmp.eq.s32.totalorder %v1545_v47, 0 }
 0x2b9   : > { %v2086_v14 = vsel %vm1925_vm4, 0.0, %v2021_v42 }
 0x2ba   : > { %2218 = vrot.lane.b32.xlu0 %v4560_v54, %s4103_s11  ;;  %2475 = vrot.lane.b32.xlu1 %v4560_v54, %s4102_s10  ;;  %v804_v54 = vadd.s32 8, %v4466_v60 }
 0x2be   : > { %2214 = vrot.lane.b32.xlu0 %v4570_v58, %s4103_s11  ;;  %2471 = vrot.lane.b32.xlu1 %v4570_v58, %s4102_s10 }
 0x2c2   : > { %2477 = vrot.lane.b32.xlu0 %v4573_v62, %s4102_s10  ;;  %2220 = vrot.lane.b32.xlu1 %v4573_v62, %s4103_s11 }
 0x2c6   : > { %2473 = vrot.lane.b32.xlu0 %v4577_v1, %s4102_s10  ;;  %2216 = vrot.lane.b32.xlu1 %v4577_v1, %s4103_s11  ;;  %v805_v1 = vadd.s32 16, %v4466_v60 }
 0x2ca   : > { %2226 = vrot.lane.b32.xlu0 %v3780_v12, %s4103_s11  ;;  %2483 = vrot.lane.b32.xlu1 %v3780_v12, %s4102_s10  ;;  %v1552_v12 = vand.u32 15, %v804_v54 }
 0x2cc   : > { %vm2119_vm6 = vcmp.eq.s32.totalorder %v1552_v12, 15 }
 0x2ce   : > { %2222 = vrot.lane.b32.xlu0 %v1434_v13, %s4103_s11  ;;  %2479 = vrot.lane.b32.xlu1 %v1434_v13, %s4102_s10 }
 0x2d2   : > { %2485 = vrot.lane.b32.xlu0 %v3781_v15, %s4102_s10  ;;  %2228 = vrot.lane.b32.xlu1 %v3781_v15, %s4103_s11 }
 0x2d6   : > { %2481 = vrot.lane.b32.xlu0 %v1437_v18, %s4102_s10  ;;  %2224 = vrot.lane.b32.xlu1 %v1437_v18, %s4103_s11 }
 0x2da   : > { %2234 = vrot.lane.b32.xlu0 %v3784_v32, %s4103_s11  ;;  %2491 = vrot.lane.b32.xlu1 %v3784_v32, %s4102_s10  ;;  %v1559_v32 = vand.u32 15, %v805_v1 }
 0x2dc   : > { %vm1927_vm7 = vcmp.eq.s32.totalorder %v1559_v32, 0 }
 0x2dd   : > { %v2088_v47 = vsel %vm1927_vm7, 0.0, %v4481_v5 }
 0x2de   : > { %2230 = vrot.lane.b32.xlu0 %v1450_v33, %s4103_s11  ;;  %2487 = vrot.lane.b32.xlu1 %v1450_v33, %s4102_s10 }
 0x2e2   : > { %2493 = vrot.lane.b32.xlu0 %v3785_v35, %s4102_s10  ;;  %2236 = vrot.lane.b32.xlu1 %v3785_v35, %s4103_s11  ;;  %v4731_v35 = vld [vmem:[%s5179_s4] ss:$0 sm:$0xff] }
 0x2e6   : > { %2489 = vrot.lane.b32.xlu0 %v1453_v37, %s4102_s10  ;;  %2232 = vrot.lane.b32.xlu1 %v1453_v37, %s4103_s11 }
 0x2ea   : > { %2238 = vrot.lane.b32.xlu0 %v1466_v43, %s4103_s11  ;;  %2244 = vrot.lane.b32.xlu1 %v3789_v46, %s4103_s11 }
 0x2ec   : > { %v2444_v57 = vpop.permute.xlu1 %2443  ;;  %v2187_v2 = vpop.permute.xlu0 %2186 }
 0x2ed   : > { %v2280_v16 = vrot.slane %v2187_v2, 1  ;;  %v2537_v54 = vadd.f32 %v2444_v57, %v2088_v47 }
 0x2ee   : > { %2242 = vrot.lane.b32.xlu0 %v4642_v40, %s4103_s11  ;;  %2240 = vrot.lane.b32.xlu1 %v1469_v49, %s4103_s11 }
 0x2f0   : > { %v4712_v58 = vpop.permute.xlu1 %2182  ;;  %v2446_v62 = vpop.permute.xlu0 %2445 }
 0x2f1   : > { %v2278_v17 = vrot.slane %v4712_v58, 1 }
 0x2f2   : > { %2495 = vrot.lane.b32.xlu0 %v1466_v43, %s4102_s10  ;;  %2497 = vrot.lane.b32.xlu1 %v1469_v49, %s4102_s10 }
 0x2f4   : > { %v2440_v13 = vpop.permute.xlu1 %2439  ;;  %v2185_v15 = vpop.permute.xlu0 %2184 }
 0x2f5   : > { %v2535_v18 = vadd.f32 %v2440_v13, %v2086_v14  ;;  %v2279_v19 = vrot.slane %v2185_v15, 1  ;;  %v1573_v13 = vand.u32 15, %v1513_v61 }
 0x2f6   : > { %2499 = vrot.lane.b32.xlu0 %v4642_v40, %s4102_s10  ;;  %2501 = vrot.lane.b32.xlu1 %v3789_v46, %s4102_s10  ;;  %v806_v40 = vadd.s32 24, %v4466_v60 }
 0x2f7   : > { %v2341_v33 = vsel %vm2310_vm5, %v2278_v17, %v2279_v19  ;;  %v2340_v34 = vsel %vm2310_vm5, %v2279_v19, %v2280_v16  ;;  %vm1929_vm9 = vcmp.eq.s32.totalorder %v1573_v13, 0 }
 0x2f8   : > { %v2567_v24 = vadd.f32 %v2535_v18, %v2341_v33  ;;  %v2189_v36 = vpop.permute.xlu1 %2188  ;;  %v2442_v37 = vpop.permute.xlu0 %2441  ;;  %v2408_v45 = vsel %vm2119_vm6, 0.0, %v2340_v34  ;;  %v1566_v2 = vand.u32 15, %v806_v40  ;;  %v1514_v18 = vadd.s32 40, %v4466_v60 }
 0x2f9   : > { %v2536_v38 = vadd.f32 %v2442_v37, %v4487_v6  ;;  %v2281_v43 = vrot.slane %v2189_v36, 1  ;;  %v1515_v34 = vadd.s32 48, %v4466_v60 }
 0x2fa   : > { %v2606_v46 = vadd.f32 %v4731_v35, %v2567_v24  ;;  %vm2121_vm8 = vcmp.eq.s32.totalorder %v1566_v2, 15  ;;  %v2538_v24 = vadd.f32 %v2446_v62, %v4477_v22  ;;  %v1580_v37 = vand.u32 15, %v1514_v18 }
 0x2fb   : > { %v2568_v52 = vadd.f32 %v2536_v38, %v2408_v45  ;;  %v2339_v6 = vsel %vm2310_vm5, %v2280_v16, %v2281_v43  ;;  %v1587_v45 = vand.u32 15, %v1515_v34 }
 0x2fc   : > { %v2452_v48 = vpop.permute.xlu1 %2451  ;;  %v2195_v49 = vpop.permute.xlu0 %2194  ;;  %v2638_v1 = vmax.f32 %v2606_v46, 0.0  ;;  %v2569_v19 = vadd.f32 %v2537_v54, %v2339_v6  ;;  %vm4750_vm10 = vcmp.eq.s32.totalorder %v1580_v37, 15 }
 0x2fd   : > { %v2607_v42 = vadd.f32 %v4731_v35, %v2568_v52  ;;  %v2090_v52 = vsel %vm1929_vm9, 0.0, %v4494_v20  ;;  %v2284_v2 = vrot.slane %v2195_v49, 1  ;;  %vm4755_vm11 = vcmp.eq.s32.totalorder %v1587_v45, 0 }
 0x2fe   : > { %v2608_v38 = vadd.f32 %v4731_v35, %v2569_v19 }
 0x2ff   : > { %v2639_v12 = vmax.f32 %v2607_v42, 0.0 }
 0x300   : > { %v2448_v14 = vpop.permute.xlu1 %2447  ;;  %v2191_v15 = vpop.permute.xlu0 %2190  ;;  %v2640_v42 = vmax.f32 %v2608_v38, 0.0 }
 0x301   : > { %v2670_v32 = vpack.c.bf16 %v2639_v12, %v2638_v1  ;;  %v2282_v33 = vrot.slane %v2191_v15, 1  ;;  %v2539_v1 = vadd.f32 %v2448_v14, %v2090_v52  ;;  %v1518_v52 = vadd.s32 72, %v4466_v60 }
 0x303   : > { %v2338_v5 = vsel %vm2310_vm5, %v2281_v43, %v2282_v33  ;;  %3792 = vmatprep.mubr.msk.bf16.mxu0 %vm685_vm2, %v2670_v32  ;;  %v1516_v43 = vadd.s32 56, %v4466_v60  ;;  %v1608_v54 = vand.u32 15, %v1518_v52 }
 0x304   : > { %v2410_v57 = vsel %vm2121_vm8, 0.0, %v2338_v5  ;;  %v2454_v16 = vpop.permute.xlu0 %2453  ;;  %v2197_v36 = vpop.permute.xlu1 %2196 }
 0x305   : > { %v2570_v40 = vadd.f32 %v2538_v24, %v2410_v57  ;;  %v2285_v12 = vrot.slane %v2197_v36, 1  ;;  %v1517_v24 = vadd.s32 64, %v4466_v60  ;;  %v1594_v14 = vand.u32 15, %v1516_v43 }
 0x306   : > { %v2542_v43 = vadd.f32 %v2454_v16, %v4500_v21  ;;  %vm4784_vm14 = vcmp.eq.s32.totalorder %v1608_v54, 15 }
 0x307   : > { %v2609_v46 = vadd.f32 %v4731_v35, %v2570_v40  ;;  %v2335_v57 = vsel %vm2310_vm5, %v2284_v2, %v2285_v12  ;;  %v1601_v40 = vand.u32 15, %v1517_v24  ;;  %vm2125_vm12 = vcmp.eq.s32.totalorder %v1594_v14, 15 }
 0x308   : > { %v2450_v61 = vpop.permute.xlu0 %2449  ;;  %v2193_v62 = vpop.permute.xlu1 %2192 }
 0x309   : > { %v2641_v47 = vmax.f32 %v2609_v46, 0.0  ;;  %v2283_v6 = vrot.slane %v2193_v62, 1  ;;  %v2540_v20 = vadd.f32 %v2450_v61, %v4508_v27  ;;  %v2092_v27 = vsel %vm4755_vm11, 0.0, %v4504_v25 }
 0x30a   : > { %v2541_v36 = vadd.f32 %v2452_v48, %v2092_v27  ;;  %v1519_v25 = vadd.s32 80, %v4466_v60  ;;  %vm1933_vm13 = vcmp.eq.s32.totalorder %v1601_v40, 0 }
 0x30b   : > { %v2671_v13 = vpack.c.bf16 %v2641_v47, %v2640_v42  ;;  %v2336_v15 = vsel %vm2310_vm5, %v2283_v6, %v2284_v2  ;;  %v2337_v18 = vsel %vm2310_vm5, %v2282_v33, %v2283_v6 }
 0x30c   : > { %v2412_v49 = vsel %vm4750_vm10, 0.0, %v2336_v15  ;;  %v2571_v19 = vadd.f32 %v2539_v1, %v2337_v18  ;;  %v2460_v32 = vpop.permute.xlu1 %2459  ;;  %v2203_v34 = vpop.permute.xlu0 %2202  ;;  %v2573_v61 = vadd.f32 %v2541_v36, %v2335_v57  ;;  %v2094_v18 = vsel %vm1933_vm13, 0.0, %v4519_v59 }
 0x30d   : > { %v2572_v5 = vadd.f32 %v2540_v20, %v2412_v49  ;;  %3793 = vmatmul.mubr.msk.bf16.vlgmr.msra.gmra.mrb[48].mxu0 %vm685_vm2, %v2671_v13  ;;  %v1615_v20 = vand.u32 15, %v1519_v25  ;;  %v1520_v49 = vadd.s32 88, %v4466_v60  ;;  %v2288_v24 = vrot.slane %v2203_v34, 1 }
 0x30e   : > { %v2610_v33 = vadd.f32 %v4731_v35, %v2571_v19  ;;  %v2612_v1 = vadd.f32 %v4731_v35, %v2573_v61  ;;  %v1521_v61 = vadd.s32 96, %v4466_v60 }
 0x30f   : > { %v2611_v37 = vadd.f32 %v4731_v35, %v2572_v5  ;;  %vm4789_vm15 = vcmp.eq.s32.totalorder %v1615_v20, 0 }
 0x310   : > { %v2642_v38 = vmax.f32 %v2610_v33, 0.0  ;;  %v2456_v45 = vpop.permute.xlu1 %2455  ;;  %v2199_v46 = vpop.permute.xlu0 %2198  ;;  %v2644_v19 = vmax.f32 %v2612_v1, 0.0  ;;  %v1522_v1 = vadd.s32 104, %v4466_v60 }
 0x311   : > { %v2286_v22 = vrot.slane %v2199_v46, 1  ;;  %v2643_v62 = vmax.f32 %v2611_v37, 0.0  ;;  %v2543_v57 = vadd.f32 %v2456_v45, %v2094_v18  ;;  %v1622_v45 = vand.u32 15, %v1520_v49 }
 0x313   : > { %v2334_v42 = vsel %vm2310_vm5, %v2285_v12, %v2286_v22  ;;  %v2672_v48 = vpack.c.bf16 %v2643_v62, %v2642_v38  ;;  %vm2129_vm0 = vcmp.eq.s32.totalorder %v1622_v45, 15 }
 0x314   : > { %v2414_v2 = vsel %vm2125_vm12, 0.0, %v2334_v42  ;;  %v2462_v47 = vpop.permute.xlu0 %2461  ;;  %v2205_v6 = vpop.permute.xlu1 %2204 }
 0x315   : > { %v2574_v13 = vadd.f32 %v2542_v43, %v2414_v2  ;;  %3796 = vmatprep.mubr.msk.bf16.mxu0 %vm685_vm2, %v2672_v48  ;;  %v2289_v33 = vrot.slane %v2205_v6, 1  ;;  %v1629_v2 = vand.u32 15, %v1521_v61  ;;  %v2546_v18 = vadd.f32 %v2462_v47, %v4525_v8 }
 0x317   : > { %v2613_v15 = vadd.f32 %v4731_v35, %v2574_v13  ;;  %vm1937_vm1 = vcmp.eq.s32.totalorder %v1629_v2, 0 }
 0x318   : > { %v2458_v21 = vpop.permute.xlu0 %2457  ;;  %v2201_v12 = vpop.permute.xlu1 %2200 }
 0x319   : > { %v2287_v5 = vrot.slane %v2201_v12, 1  ;;  %v2645_v14 = vmax.f32 %v2613_v15, 0.0  ;;  %v2544_v59 = vadd.f32 %v2458_v21, %v4533_v29  ;;  %v2096_v29 = vsel %vm4789_vm15, 0.0, %v4529_v26 }
 0x31a   : > { %v2545_v43 = vadd.f32 %v2460_v32, %v2096_v29  ;;  %v1523_v26 = vadd.s32 112, %v4466_v60 }
 0x31b   : > { %v2332_v36 = vsel %vm2310_vm5, %v2287_v5, %v2288_v24  ;;  %v2333_v37 = vsel %vm2310_vm5, %v2286_v22, %v2287_v5  ;;  %v2673_v38 = vpack.c.bf16 %v2645_v14, %v2644_v19  ;;  %v2331_v22 = vsel %vm2310_vm5, %v2288_v24, %v2289_v33 }
 0x31c   : > { %v2416_v34 = vsel %vm4784_vm14, 0.0, %v2332_v36  ;;  %v2575_v40 = vadd.f32 %v2543_v57, %v2333_v37  ;;  %v2468_v46 = vpop.permute.xlu1 %2467  ;;  %v2211_v52 = vpop.permute.xlu0 %2210  ;;  %v2577_v13 = vadd.f32 %v2545_v43, %v2331_v22  ;;  %v1636_v19 = vand.u32 15, %v1522_v1 }
 0x31d   : > { %v2576_v62 = vadd.f32 %v2544_v59, %v2416_v34  ;;  %3797 = vmatmul.mubr.msk.bf16.gmra.mrb[52].mxu0 %vm685_vm2, %v2673_v38  ;;  %v1643_v14 = vand.u32 15, %v1523_v26  ;;  %v2098_v57 = vsel %vm1937_vm1, 0.0, %v4552_v53  ;;  %v1524_v59 = vadd.s32 120, %v4466_v60 }
 0x31e   : > { %v2614_v25 = vadd.f32 %v4731_v35, %v2575_v40  ;;  %v2616_v24 = vadd.f32 %v4731_v35, %v2577_v13  ;;  %vm4818_vm3 = vcmp.eq.s32.totalorder %v1636_v19, 15  ;;  %v2292_v37 = vrot.slane %v2211_v52, 1 }
 0x31f   : > { %v2615_v42 = vadd.f32 %v4731_v35, %v2576_v62  ;;  %vm4823_vm4 = vcmp.eq.s32.totalorder %v1643_v14, 0 }
 0x320   : > { %v2646_v48 = vmax.f32 %v2614_v25, 0.0  ;;  %v2464_v6 = vpop.permute.xlu1 %2463  ;;  %v2207_v54 = vpop.permute.xlu0 %2206  ;;  %v2648_v36 = vmax.f32 %v2616_v24, 0.0 }
 0x321   : > { %v2290_v20 = vrot.slane %v2207_v54, 1  ;;  %v2647_v15 = vmax.f32 %v2615_v42, 0.0  ;;  %v2547_v61 = vadd.f32 %v2464_v6, %v2098_v57  ;;  %v1650_v6 = vand.u32 15, %v1524_v59 }
 0x323   : > { %v2330_v21 = vsel %vm2310_vm5, %v2289_v33, %v2290_v20  ;;  %v2674_v32 = vpack.c.bf16 %v2647_v15, %v2646_v48  ;;  %v1525_v48 = vadd.s32 128, %v4466_v60  ;;  %vm2133_vm6 = vcmp.eq.s32.totalorder %v1650_v6, 15 }
 0x324   : > { %v2418_v16 = vsel %vm2129_vm0, 0.0, %v2330_v21  ;;  %v2470_v12 = vpop.permute.xlu0 %2469  ;;  %v2213_v49 = vpop.permute.xlu1 %2212 }
 0x325   : > { %v2578_v5 = vadd.f32 %v2546_v18, %v2418_v16  ;;  %3800 = vmatprep.mubr.msk.bf16.mxu0 %vm685_vm2, %v2674_v32  ;;  %v2293_v62 = vrot.slane %v2213_v49, 1  ;;  %v1657_v18 = vand.u32 15, %v1525_v48  ;;  %v1526_v32 = vadd.s32 136, %v4466_v60 }
 0x326   : > { %v2550_v24 = vadd.f32 %v2470_v12, %v4558_v50 }
 0x327   : > { %v2617_v27 = vadd.f32 %v4731_v35, %v2578_v5  ;;  %v2327_v54 = vsel %vm2310_vm5, %v2292_v37, %v2293_v62  ;;  %vm1941_vm7 = vcmp.eq.s32.totalorder %v1657_v18, 0 }
 0x328   : > { %v2466_v8 = vpop.permute.xlu0 %2465  ;;  %v2209_v33 = vpop.permute.xlu1 %2208 }
 0x329   : > { %v2291_v38 = vrot.slane %v2209_v33, 1  ;;  %v2649_v34 = vmax.f32 %v2617_v27, 0.0  ;;  %v2548_v53 = vadd.f32 %v2466_v8, %v4568_v55  ;;  %v2100_v55 = vsel %vm4823_vm4, 0.0, %v4564_v51 }
 0x32a   : > { %v2549_v13 = vadd.f32 %v2468_v46, %v2100_v55  ;;  %v1527_v51 = vadd.s32 144, %v4466_v60  ;;  %v1664_v8 = vand.u32 15, %v1526_v32 }
 0x32b   : > { %v2328_v45 = vsel %vm2310_vm5, %v2291_v38, %v2292_v37  ;;  %v2329_v29 = vsel %vm2310_vm5, %v2290_v20, %v2291_v38  ;;  %v2675_v22 = vpack.c.bf16 %v2649_v34, %v2648_v36  ;;  %v2102_v37 = vsel %vm1941_vm7, 0.0, %v4584_v4 }
 0x32c   : > { %v2420_v52 = vsel %vm4818_vm3, 0.0, %v2328_v45  ;;  %v2579_v25 = vadd.f32 %v2547_v61, %v2329_v29  ;;  %v2219_v43 = vpop.permute.xlu0 %2218  ;;  %v2476_v42 = vpop.permute.xlu1 %2475  ;;  %v2581_v16 = vadd.f32 %v2549_v13, %v2327_v54  ;;  %v1671_v59 = vand.u32 15, %v1527_v51 }
 0x32d   : > { %v2580_v2 = vadd.f32 %v2548_v53, %v2420_v52  ;;  %3801 = vmatmul.mubr.msk.bf16.gmra.mrb[56].mxu0 %vm685_vm2, %v2675_v22  ;;  %vm4852_vm8 = vcmp.eq.s32.totalorder %v1664_v8, 15  ;;  %v1528_v34 = vadd.s32 152, %v4466_v60  ;;  %v2296_v61 = vrot.slane %v2219_v43, 1 }
 0x32e   : > { %v2618_v1 = vadd.f32 %v4731_v35, %v2579_v25  ;;  %v2620_v47 = vadd.f32 %v4731_v35, %v2581_v16  ;;  %vm4857_vm9 = vcmp.eq.s32.totalorder %v1671_v59, 0  ;;  %v1529_v54 = vadd.s32 160, %v4466_v60 }
 0x32f   : > { %v2619_v20 = vadd.f32 %v4731_v35, %v2580_v2  ;;  %v1678_v13 = vand.u32 15, %v1528_v34  ;;  %v1532_v34 = vadd.s32 184, %v4466_v60 }
 0x330   : > { %v2650_v15 = vmax.f32 %v2618_v1, 0.0  ;;  %v2215_v26 = vpop.permute.xlu0 %2214  ;;  %v2472_v21 = vpop.permute.xlu1 %2471  ;;  %v2652_v40 = vmax.f32 %v2620_v47, 0.0  ;;  %v1685_v16 = vand.u32 15, %v1529_v54 }
 0x331   : > { %v2294_v49 = vrot.slane %v2215_v26, 1  ;;  %v2651_v19 = vmax.f32 %v2619_v20, 0.0  ;;  %v2551_v29 = vadd.f32 %v2472_v21, %v2102_v37  ;;  %vm2137_vm10 = vcmp.eq.s32.totalorder %v1678_v13, 15 }
 0x332   : > { %vm1945_vm11 = vcmp.eq.s32.totalorder %v1685_v16, 0 }
 0x333   : > { %v2326_v5 = vsel %vm2310_vm5, %v2293_v62, %v2294_v49  ;;  %v2676_v46 = vpack.c.bf16 %v2651_v19, %v2650_v15  ;;  %v1530_v19 = vadd.s32 168, %v4466_v60  ;;  %v2106_v12 = vsel %vm1945_vm11, 0.0, %v4604_v23 }
 0x334   : > { %v2422_v14 = vsel %vm2133_vm6, 0.0, %v2326_v5  ;;  %v2478_v27 = vpop.permute.xlu0 %2477  ;;  %v2221_v57 = vpop.permute.xlu1 %2220 }
 0x335   : > { %v2582_v33 = vadd.f32 %v2550_v24, %v2422_v14  ;;  %3804 = vmatprep.mubr.msk.bf16.mxu0 %vm685_vm2, %v2676_v46  ;;  %v2297_v22 = vrot.slane %v2221_v57, 1  ;;  %v2554_v46 = vadd.f32 %v2478_v27, %v4588_v7 }
 0x337   : > { %v2621_v36 = vadd.f32 %v4731_v35, %v2582_v33  ;;  %v2323_v20 = vsel %vm2310_vm5, %v2296_v61, %v2297_v22  ;;  %v1692_v33 = vand.u32 15, %v1530_v19 }
 0x338   : > { %v2474_v50 = vpop.permute.xlu0 %2473  ;;  %v2217_v38 = vpop.permute.xlu1 %2216 }
 0x339   : > { %v2295_v62 = vrot.slane %v2217_v38, 1  ;;  %v2653_v53 = vmax.f32 %v2621_v36, 0.0  ;;  %v2552_v4 = vadd.f32 %v2474_v50, %v4596_v10  ;;  %v2104_v10 = vsel %vm4857_vm9, 0.0, %v4592_v9 }
 0x33a   : > { %v2553_v26 = vadd.f32 %v2476_v42, %v2104_v10  ;;  %v1531_v9 = vadd.s32 176, %v4466_v60  ;;  %vm4886_vm12 = vcmp.eq.s32.totalorder %v1692_v33, 15 }
 0x33b   : > { %v2324_v52 = vsel %vm2310_vm5, %v2295_v62, %v2296_v61  ;;  %v2325_v25 = vsel %vm2310_vm5, %v2294_v49, %v2295_v62  ;;  %v2677_v48 = vpack.c.bf16 %v2653_v53, %v2652_v40 }
 0x33c   : > { %v2424_v43 = vsel %vm4852_vm8, 0.0, %v2324_v52  ;;  %v2583_v2 = vadd.f32 %v2551_v29, %v2325_v25  ;;  %v2227_v6 = vpop.permute.xlu0 %2226  ;;  %v2484_v55 = vpop.permute.xlu1 %2483  ;;  %v2585_v51 = vadd.f32 %v2553_v26, %v2323_v20  ;;  %v1699_v37 = vand.u32 15, %v1531_v9 }
 0x33d   : > { %v2584_v1 = vadd.f32 %v2552_v4, %v2424_v43  ;;  %3805 = vmatmul.mubr.msk.bf16.gmra.mrb[60].mxu0 %vm685_vm2, %v2677_v48  ;;  %v2300_v61 = vrot.slane %v2227_v6, 1  ;;  %v1535_v6 = vadd.s32 208, %v4466_v60 }
 0x33e   : > { %v2622_v15 = vadd.f32 %v4731_v35, %v2583_v2  ;;  %v2624_v59 = vadd.f32 %v4731_v35, %v2585_v51  ;;  %vm4891_vm13 = vcmp.eq.s32.totalorder %v1699_v37, 0  ;;  %v1534_v51 = vadd.s32 200, %v4466_v60 }
 0x33f   : > { %v2623_v18 = vadd.f32 %v4731_v35, %v2584_v1  ;;  %v1533_v1 = vadd.s32 192, %v4466_v60  ;;  %v2108_v10 = vsel %vm4891_vm13, 0.0, %v4612_v30 }
 0x340   : > { %v2654_v21 = vmax.f32 %v2622_v15, 0.0  ;;  %v2223_v32 = vpop.permute.xlu0 %2222  ;;  %v2480_v49 = vpop.permute.xlu1 %2479  ;;  %v2656_v40 = vmax.f32 %v2624_v59, 0.0  ;;  %v2557_v26 = vadd.f32 %v2484_v55, %v2108_v10  ;;  %v1720_v33 = vand.u32 15, %v1534_v51 }
 0x341   : > { %v2298_v24 = vrot.slane %v2223_v32, 1  ;;  %v2655_v5 = vmax.f32 %v2623_v18, 0.0  ;;  %v2555_v29 = vadd.f32 %v2480_v49, %v2106_v12  ;;  %v1727_v32 = vand.u32 15, %v1535_v6 }
 0x342   : > { %v1713_v49 = vand.u32 15, %v1533_v1  ;;  %v1536_v59 = vadd.s32 216, %v4466_v60  ;;  %vm4935_vm1 = vcmp.eq.s32.totalorder %v1720_v33, 15 }
 0x343   : > { %v2322_v14 = vsel %vm2310_vm5, %v2297_v22, %v2298_v24  ;;  %v2678_v42 = vpack.c.bf16 %v2655_v5, %v2654_v21  ;;  %vm4922_vm0 = vcmp.eq.s32.totalorder %v1727_v32, 0 }
 0x344   : > { %v2426_v57 = vsel %vm2137_vm10, 0.0, %v2322_v14  ;;  %v2486_v8 = vpop.permute.xlu0 %2485  ;;  %v2229_v47 = vpop.permute.xlu1 %2228  ;;  %vm4916_vm15 = vcmp.eq.s32.totalorder %v1713_v49, 0  ;;  %v2112_v27 = vsel %vm4922_vm0, 0.0, %v4632_v56 }
 0x345   : > { %v2586_v36 = vadd.f32 %v2554_v46, %v2426_v57  ;;  %3808 = vmatprep.mubr.msk.bf16.mxu0 %vm685_vm2, %v2678_v42  ;;  %v2301_v22 = vrot.slane %v2229_v47, 1  ;;  %v2558_v30 = vadd.f32 %v2486_v8, %v4608_v28 }
 0x347   : > { %v2625_v50 = vadd.f32 %v4731_v35, %v2586_v36  ;;  %v2319_v20 = vsel %vm2310_vm5, %v2300_v61, %v2301_v22 }
 0x348   : > { %v2482_v7 = vpop.permute.xlu0 %2481  ;;  %v2225_v38 = vpop.permute.xlu1 %2224 }
 0x349   : > { %v2299_v62 = vrot.slane %v2225_v38, 1  ;;  %v2657_v53 = vmax.f32 %v2625_v50, 0.0  ;;  %v2556_v23 = vadd.f32 %v2482_v7, %v4616_v31  ;;  %v1706_v31 = vand.u32 15, %v1532_v34 }
 0x34a   : > { %v1537_v50 = vadd.s32 224, %v4466_v60  ;;  %v2110_v38 = vsel %vm4916_vm15, 0.0, %v4624_v39 }
 0x34b   : > { %v2320_v4 = vsel %vm2310_vm5, %v2299_v62, %v2300_v61  ;;  %v2321_v52 = vsel %vm2310_vm5, %v2298_v24, %v2299_v62  ;;  %v2679_v25 = vpack.c.bf16 %v2657_v53, %v2656_v40  ;;  %v2589_v24 = vadd.f32 %v2557_v26, %v2319_v20 }
 0x34c   : > { %v2428_v48 = vsel %vm4886_vm12, 0.0, %v2320_v4  ;;  %v2587_v43 = vadd.f32 %v2555_v29, %v2321_v52  ;;  %v2235_v2 = vpop.permute.xlu0 %2234  ;;  %v2492_v54 = vpop.permute.xlu1 %2491  ;;  %vm2141_vm14 = vcmp.eq.s32.totalorder %v1706_v31, 15  ;;  %v1734_v62 = vand.u32 15, %v1536_v59 }
 0x34d   : > { %v2588_v13 = vadd.f32 %v2556_v23, %v2428_v48  ;;  %3809 = vmatmul.mubr.msk.bf16.gmra.mrb[64].mxu0 %vm685_vm2, %v2679_v25  ;;  %v2628_v36 = vadd.f32 %v4731_v35, %v2589_v24  ;;  %v2304_v12 = vrot.slane %v2235_v2, 1  ;;  %v2561_v23 = vadd.f32 %v2492_v54, %v2112_v27 }
 0x34e   : > { %v2626_v15 = vadd.f32 %v4731_v35, %v2587_v43  ;;  %v1741_v56 = vand.u32 15, %v1537_v50  ;;  %v1538_v52 = vadd.s32 232, %v4466_v60  ;;  %v1539_v31 = vadd.s32 240, %v4466_v60 }
 0x34f   : > { %v2627_v18 = vadd.f32 %v4731_v35, %v2588_v13  ;;  %v2660_v53 = vmax.f32 %v2628_v36, 0.0  ;;  %vm4950_vm3 = vcmp.eq.s32.totalorder %v1734_v62, 15 }
 0x350   : > { %v2658_v21 = vmax.f32 %v2626_v15, 0.0  ;;  %v2231_v16 = vpop.permute.xlu0 %2230  ;;  %v2488_v19 = vpop.permute.xlu1 %2487  ;;  %v1748_v26 = vand.u32 15, %v1538_v52  ;;  %vm4961_vm4 = vcmp.eq.s32.totalorder %v1741_v56, 0 }
 0x351   : > { %v2302_v5 = vrot.slane %v2231_v16, 1  ;;  %v2659_v9 = vmax.f32 %v2627_v18, 0.0  ;;  %v2559_v4 = vadd.f32 %v2488_v19, %v2110_v38  ;;  %v1540_v18 = vadd.s32 248, %v4466_v60 }
 0x352   : > { %vm4968_vm6 = vcmp.eq.s32.totalorder %v1748_v26, 15  ;;  %v2114_v37 = vsel %vm4961_vm4, 0.0, %v4651_v63 }
 0x353   : > { %v2318_v46 = vsel %vm2310_vm5, %v2301_v22, %v2302_v5  ;;  %v2680_v14 = vpack.c.bf16 %v2659_v9, %v2658_v21 }
 0x354   : > { %v2430_v55 = vsel %vm2141_vm14, 0.0, %v2318_v46  ;;  %v2494_v57 = vpop.permute.xlu0 %2493  ;;  %v2237_v47 = vpop.permute.xlu1 %2236 }
 0x355   : > { %v2590_v28 = vadd.f32 %v2558_v30, %v2430_v55  ;;  %v2305_v8 = vrot.slane %v2237_v47, 1  ;;  %3812 = vmatprep.mubr.msk.bf16.mxu0 %vm685_vm2, %v2680_v14  ;;  %v2562_v21 = vadd.f32 %v2494_v57, %v4628_v11  ;;  %v1755_v30 = vand.u32 15, %v1539_v31  ;;  %v5014_v31 = vld [vmem:[%s5181_s6] ss:$0 sm:$0xff] }
 0x356   : > { %v1762_v57 = vand.u32 15, %v1540_v18 }
 0x357   : > { %v2629_v7 = vadd.f32 %v4731_v35, %v2590_v28  ;;  %v2315_v45 = vsel %vm2310_vm5, %v2304_v12, %v2305_v8  ;;  %vm4978_vm7 = vcmp.eq.s32.totalorder %v1755_v30, 0 }
 0x358   : > { %v2490_v34 = vpop.permute.xlu0 %2489  ;;  %v2233_v61 = vpop.permute.xlu1 %2232  ;;  %v2593_v2 = vadd.f32 %v2561_v23, %v2315_v45  ;;  %vm4988_vm8 = vcmp.eq.s32.totalorder %v1762_v57, 15  ;;  %v2116_v45 = vsel %vm4978_vm7, 0.0, %v4667_v44 }
 0x359   : > { %v2303_v29 = vrot.slane %v2233_v61, 1  ;;  %v2661_v22 = vmax.f32 %v2629_v7, 0.0  ;;  %v2560_v39 = vadd.f32 %v2490_v34, %v4636_v41 }
 0x35a   : > { %v2632_v19 = vadd.f32 %v4731_v35, %v2593_v2 }
 0x35b   : > { %v2316_v25 = vsel %vm2310_vm5, %v2303_v29, %v2304_v12  ;;  %v2317_v48 = vsel %vm2310_vm5, %v2302_v5, %v2303_v29  ;;  %v2681_v43 = vpack.c.bf16 %v2661_v22, %v2660_v53 }
 0x35c   : > { %v2432_v6 = vsel %vm4935_vm1, 0.0, %v2316_v25  ;;  %v2591_v1 = vadd.f32 %v2559_v4, %v2317_v48  ;;  %v2239_v13 = vpop.permute.xlu0 %2238  ;;  %v2245_v54 = vpop.permute.xlu1 %2244  ;;  %v2664_v12 = vmax.f32 %v2632_v19, 0.0 }
 0x35d   : > { %v2592_v10 = vadd.f32 %v2560_v39, %v2432_v6  ;;  %v2306_v41 = vrot.slane %v2239_v13, 1  ;;  %3813 = vmatmul.mubr.msk.bf16.gmra.mrb[68].mxu0 %vm685_vm2, %v2681_v43  ;;  %v2309_v33 = vrot.slane %v2245_v54, 1  ;;  %v3545_v13 = vld [vmem:[#allocation3 + $0x8] sm:$0xff]   ;;  %v3482_v54 = vld [vmem:[#allocation3] sm:$0xff]  }
 0x35e   : > { %v2630_v15 = vadd.f32 %v4731_v35, %v2591_v1  ;;  %v3488_v26 = vunpack.c.h.bf16 %v3545_v13 }
 0x35f   : > { %v2631_v32 = vadd.f32 %v4731_v35, %v2592_v10  ;;  %v2314_v16 = vsel %vm2310_vm5, %v2305_v8, %v2306_v41  ;;  %v3487_v10 = vunpack.c.l.bf16 %v3545_v13 }
 0x360   : > { %v2662_v51 = vmax.f32 %v2630_v15, 0.0  ;;  %v2434_v24 = vsel %vm4950_vm3, 0.0, %v2314_v16  ;;  %v2243_v5 = vpop.permute.xlu0 %2242  ;;  %v2241_v9 = vpop.permute.xlu1 %2240 }
 0x361   : > { %v2594_v46 = vadd.f32 %v2562_v21, %v2434_v24  ;;  %v2308_v11 = vrot.slane %v2243_v5, 1  ;;  %v2307_v14 = vrot.slane %v2241_v9, 1  ;;  %v2663_v55 = vmax.f32 %v2631_v32, 0.0 }
 0x362   : > { %v3484_v32 = vunpack.c.h.bf16 %v3482_v54 }
 0x363   : > { %v2633_v47 = vadd.f32 %v4731_v35, %v2594_v46  ;;  %v2312_v59 = vsel %vm2310_vm5, %v2307_v14, %v2308_v11  ;;  %v2682_v36 = vpack.c.bf16 %v2663_v55, %v2662_v51  ;;  %v2313_v34 = vsel %vm2310_vm5, %v2306_v41, %v2307_v14 }
 0x364   : > { %v2496_v28 = vpop.permute.xlu0 %2495  ;;  %v2498_v8 = vpop.permute.xlu1 %2497  ;;  %v2436_v40 = vsel %vm4968_vm6, 0.0, %v2312_v59  ;;  %v2311_v58 = vsel %vm2310_vm5, %v2308_v11, %v2309_v33  ;;  %v3483_v41 = vunpack.c.l.bf16 %v3482_v54  ;;  %v3546_v59 = vld [vmem:[#allocation3 + $0x10] sm:$0xff]  }
 0x365   : > { %v2563_v7 = vadd.f32 %v2496_v28, %v2114_v37  ;;  %v2564_v27 = vadd.f32 %v2498_v8, %v4663_v3  ;;  %3816 = vmatprep.mubr.msk.bf16.mxu0 %vm685_vm2, %v2682_v36  ;;  %v2665_v38 = vmax.f32 %v2633_v47, 0.0  ;;  %v2342_v3 = vsel %vm2310_vm5, %v2309_v33, %v2278_v17  ;;  %v3547_v33 = vld [vmem:[#allocation3 + $0x18] sm:$0xff]  }
 0x366   : > { %v2438_v17 = vsel %vm4988_vm8, 0.0, %v2342_v3  ;;  %v3495_v36 = vunpack.c.l.bf16 %v3547_v33  ;;  %v3491_v28 = vunpack.c.l.bf16 %v3546_v59 }
 0x367   : > { %v2595_v61 = vadd.f32 %v2563_v7, %v2313_v34  ;;  %v2596_v62 = vadd.f32 %v2564_v27, %v2436_v40  ;;  %v2683_v53 = vpack.c.bf16 %v2665_v38, %v2664_v12  ;;  %v3496_v12 = vunpack.c.h.bf16 %v3547_v33 }
 0x368   : > { %v2500_v29 = vpop.permute.xlu0 %2499  ;;  %v2502_v22 = vpop.permute.xlu1 %2501  ;;  %v3492_v38 = vunpack.c.h.bf16 %v3546_v59 }
 0x369   : > { %v2634_v23 = vadd.f32 %v4731_v35, %v2595_v61  ;;  %v2635_v4 = vadd.f32 %v4731_v35, %v2596_v62  ;;  %v2565_v56 = vadd.f32 %v2500_v29, %v2116_v45  ;;  %v2566_v52 = vadd.f32 %v2502_v22, %v4659_v0  ;;  %3817 = vmatmul.mubr.msk.bf16.gmra.mrb[72].mxu0 %vm685_vm2, %v2683_v53 }
 0x36b   : > { %v2666_v39 = vmax.f32 %v2634_v23, 0.0  ;;  %v2667_v44 = vmax.f32 %v2635_v4, 0.0  ;;  %v2597_v25 = vadd.f32 %v2565_v56, %v2311_v58  ;;  %v2598_v48 = vadd.f32 %v2566_v52, %v2438_v17  ;;  %v3549_v17 = vld [vmem:[#allocation3 + $0x28] sm:$0xff]  }
 0x36d   : > { %v2684_v43 = vpack.c.bf16 %v2667_v44, %v2666_v39  ;;  %v2636_v2 = vadd.f32 %v4731_v35, %v2597_v25  ;;  %v2637_v6 = vadd.f32 %v4731_v35, %v2598_v48  ;;  %v3548_v39 = vld [vmem:[#allocation3 + $0x20] sm:$0xff]   ;;  %v3503_v44 = vunpack.c.l.bf16 %v3549_v17 }
 0x36e   : > { %v3499_v48 = vunpack.c.l.bf16 %v3548_v39 }
 0x36f   : > { %v2668_v1 = vmax.f32 %v2636_v2, 0.0  ;;  %v2669_v0 = vmax.f32 %v2637_v6, 0.0  ;;  %3820 = vmatprep.mubr.msk.bf16.mxu0 %vm685_vm2, %v2684_v43  ;;  %v3504_v6 = vunpack.c.h.bf16 %v3549_v17 }
 0x371   : > { %v2685_v60 = vpack.c.bf16 %v2669_v0, %v2668_v1 }
 0x373   : > { %3821 = vmatmul.mubr.msk.bf16.gmra.mrb[76].mxu0 %vm685_vm2, %v2685_v60  ;;  %vm3162_vm2 = vcmask 125952   ;;  %v3500_v60 = vunpack.c.h.bf16 %v3548_v39 }
 0x3e0   : > { %v3794_v20 = vpop.f32.mrb[48].mxu0 }
 0x3e1   : > { %v2788_v35 = vadd.f32 %v3794_v20, %v5014_v31  ;;  %v2779_v15 = vpop.f32.mrb[49].mxu0 }
 0x3e2   : > { %v2780_v18 = vadd.f32 %v5014_v31, %v2779_v15  ;;  %v3795_v21 = vpop.f32.mrb[50].mxu0 }
 0x3e3   : > { %v2972_v16 = vadd.f32 %v3487_v10, %v2788_v35  ;;  %v2791_v49 = vadd.f32 %v3795_v21, %v5014_v31  ;;  %v2782_v19 = vpop.f32.mrb[51].mxu0 }
 0x3e4   : > { %v2970_v51 = vadd.f32 %v3483_v41, %v2780_v18  ;;  %v2783_v24 = vadd.f32 %v5014_v31, %v2782_v19 }
 0x3e5   : > { %v3004_v5 = vmax.f32 %v2972_v16, 0.0  ;;  %v2973_v9 = vadd.f32 %v3488_v26, %v2791_v49 }
 0x3e6   : > { %v3002_v30 = vmax.f32 %v2970_v51, 0.0  ;;  %v2971_v46 = vadd.f32 %v3484_v32, %v2783_v24  ;;  %v3551_v24 = vld [vmem:[#allocation3 + $0x38] sm:$0xff]  }
 0x3e7   : > { %v3450_v11 = vpack.c.bf16 %v3004_v5, %v3004_v5  ;;  %v3005_v14 = vmax.f32 %v2973_v9, 0.0  ;;  %v3550_v5 = vld [vmem:[#allocation3 + $0x30] sm:$0xff]   ;;  %v3511_v9 = vunpack.c.l.bf16 %v3551_v24 }
 0x3e8   : > { %v3448_v55 = vpack.c.bf16 %v3002_v30, %v3002_v30  ;;  %v3003_v42 = vmax.f32 %v2971_v46, 0.0  ;;  %v3507_v46 = vunpack.c.l.bf16 %v3550_v5 }
 0x3e9   : > { %3165 = vst.msk [vmem:[%s5023_s30 + $0x8] sm:$0xf] %vm3162_vm2, %v3450_v11  ;;  %v3451_v57 = vpack.c.bf16 %v3005_v14, %v3005_v14 }
 0x3ea   : > { %3163 = vst.msk [vmem:[%s5023_s30] sm:$0xf] %vm3162_vm2, %v3448_v55  ;;  %v3449_v47 = vpack.c.bf16 %v3003_v42, %v3003_v42  ;;  %v3512_v55 = vunpack.c.h.bf16 %v3551_v24 }
 0x3eb   : > { %3166 = vst.msk [vmem:[%s5023_s30 + $0xc] sm:$0xf] %vm3162_vm2, %v3451_v57 }
 0x3ec   : > { %3164 = vst.msk [vmem:[%s5023_s30 + $0x4] sm:$0xf] %vm3162_vm2, %v3449_v47  ;;  %v3508_v47 = vunpack.c.h.bf16 %v3550_v5 }
 0x3f0   : > { %v3798_v37 = vpop.f32.mrb[52].mxu0 }
 0x3f1   : > { %v2804_v8 = vadd.f32 %v3798_v37, %v5014_v31  ;;  %v2795_v50 = vpop.f32.mrb[53].mxu0 }
 0x3f2   : > { %v2796_v7 = vadd.f32 %v5014_v31, %v2795_v50  ;;  %v3799_v27 = vpop.f32.mrb[54].mxu0 }
 0x3f3   : > { %v2976_v34 = vadd.f32 %v3495_v36, %v2804_v8  ;;  %v2807_v40 = vadd.f32 %v3799_v27, %v5014_v31  ;;  %v2798_v63 = vpop.f32.mrb[55].mxu0 }
 0x3f4   : > { %v2974_v61 = vadd.f32 %v3491_v28, %v2796_v7  ;;  %v2799_v62 = vadd.f32 %v5014_v31, %v2798_v63 }
 0x3f5   : > { %v3008_v3 = vmax.f32 %v2976_v34, 0.0  ;;  %v2977_v53 = vadd.f32 %v3496_v12, %v2807_v40 }
 0x3f6   : > { %v3006_v45 = vmax.f32 %v2974_v61, 0.0  ;;  %v2975_v29 = vadd.f32 %v3492_v38, %v2799_v62  ;;  %v3553_v62 = vld [vmem:[#allocation3 + $0x48] sm:$0xff]  }
 0x3f7   : > { %v3454_v22 = vpack.c.bf16 %v3008_v3, %v3008_v3  ;;  %v3009_v23 = vmax.f32 %v2977_v53, 0.0  ;;  %v3552_v3 = vld [vmem:[#allocation3 + $0x40] sm:$0xff]   ;;  %v3519_v53 = vunpack.c.l.bf16 %v3553_v62 }
 0x3f8   : > { %v3452_v4 = vpack.c.bf16 %v3006_v45, %v3006_v45  ;;  %v3007_v56 = vmax.f32 %v2975_v29, 0.0  ;;  %v3515_v29 = vunpack.c.l.bf16 %v3552_v3 }
 0x3f9   : > { %3169 = vst.msk [vmem:[%s5023_s30 + $0x18] sm:$0xf] %vm3162_vm2, %v3454_v22  ;;  %v3455_v52 = vpack.c.bf16 %v3009_v23, %v3009_v23 }
 0x3fa   : > { %3167 = vst.msk [vmem:[%s5023_s30 + $0x10] sm:$0xf] %vm3162_vm2, %v3452_v4  ;;  %v3453_v58 = vpack.c.bf16 %v3007_v56, %v3007_v56  ;;  %v3520_v4 = vunpack.c.h.bf16 %v3553_v62 }
 0x3fb   : > { %3170 = vst.msk [vmem:[%s5023_s30 + $0x1c] sm:$0xf] %vm3162_vm2, %v3455_v52 }
 0x3fc   : > { %3168 = vst.msk [vmem:[%s5023_s30 + $0x14] sm:$0xf] %vm3162_vm2, %v3453_v58  ;;  %v3516_v58 = vunpack.c.h.bf16 %v3552_v3 }
 0x400   : > { %v3802_v25 = vpop.f32.mrb[56].mxu0 }
 0x401   : > { %v2820_v43 = vadd.f32 %v3802_v25, %v5014_v31  ;;  %v2811_v2 = vpop.f32.mrb[57].mxu0 }
 0x402   : > { %v2812_v1 = vadd.f32 %v5014_v31, %v2811_v2  ;;  %v3803_v0 = vpop.f32.mrb[58].mxu0 }
 0x403   : > { %v2980_v13 = vadd.f32 %v3503_v44, %v2820_v43  ;;  %v2823_v54 = vadd.f32 %v3803_v0, %v5014_v31  ;;  %v2814_v10 = vpop.f32.mrb[59].mxu0 }
 0x404   : > { %v2978_v20 = vadd.f32 %v3499_v48, %v2812_v1  ;;  %v2815_v41 = vadd.f32 %v5014_v31, %v2814_v10 }
 0x405   : > { %v3012_v35 = vmax.f32 %v2980_v13, 0.0  ;;  %v2981_v15 = vadd.f32 %v3504_v6, %v2823_v54 }
 0x406   : > { %v3010_v26 = vmax.f32 %v2978_v20, 0.0  ;;  %v2979_v18 = vadd.f32 %v3500_v60, %v2815_v41  ;;  %v3555_v41 = vld [vmem:[#allocation3 + $0x58] sm:$0xff]  }
 0x407   : > { %v3458_v21 = vpack.c.bf16 %v3012_v35, %v3012_v35  ;;  %v3013_v32 = vmax.f32 %v2981_v15, 0.0  ;;  %v3554_v35 = vld [vmem:[#allocation3 + $0x50] sm:$0xff]   ;;  %v3527_v15 = vunpack.c.l.bf16 %v3555_v41 }
 0x408   : > { %v3456_v16 = vpack.c.bf16 %v3010_v26, %v3010_v26  ;;  %v3011_v49 = vmax.f32 %v2979_v18, 0.0  ;;  %v3523_v18 = vunpack.c.l.bf16 %v3554_v35 }
 0x409   : > { %3173 = vst.msk [vmem:[%s5023_s30 + $0x28] sm:$0xf] %vm3162_vm2, %v3458_v21  ;;  %v3459_v19 = vpack.c.bf16 %v3013_v32, %v3013_v32 }
 0x40a   : > { %3171 = vst.msk [vmem:[%s5023_s30 + $0x20] sm:$0xf] %vm3162_vm2, %v3456_v16  ;;  %v3457_v51 = vpack.c.bf16 %v3011_v49, %v3011_v49  ;;  %v3528_v16 = vunpack.c.h.bf16 %v3555_v41 }
 0x40b   : > { %3174 = vst.msk [vmem:[%s5023_s30 + $0x2c] sm:$0xf] %vm3162_vm2, %v3459_v19 }
 0x40c   : > { %3172 = vst.msk [vmem:[%s5023_s30 + $0x24] sm:$0xf] %vm3162_vm2, %v3457_v51  ;;  %v3524_v51 = vunpack.c.h.bf16 %v3554_v35 }
 0x410   : > { %v3806_v30 = vpop.f32.mrb[60].mxu0 }
 0x411   : > { %v2836_v11 = vadd.f32 %v3806_v30, %v5014_v31  ;;  %v2827_v14 = vpop.f32.mrb[61].mxu0 }
 0x412   : > { %v2828_v42 = vadd.f32 %v5014_v31, %v2827_v14  ;;  %v3807_v57 = vpop.f32.mrb[62].mxu0 }
 0x413   : > { %v2984_v33 = vadd.f32 %v3511_v9, %v2836_v11  ;;  %v2839_v59 = vadd.f32 %v3807_v57, %v5014_v31  ;;  %v2830_v36 = vpop.f32.mrb[63].mxu0 }
 0x414   : > { %v2982_v37 = vadd.f32 %v3507_v46, %v2828_v42  ;;  %v2831_v28 = vadd.f32 %v5014_v31, %v2830_v36  ;;  %v3557_v36 = vld [vmem:[#allocation3 + $0x68] sm:$0xff]  }
 0x415   : > { %v3016_v8 = vmax.f32 %v2984_v33, 0.0  ;;  %v2985_v50 = vadd.f32 %v3512_v55, %v2839_v59 }
 0x416   : > { %v3014_v12 = vmax.f32 %v2982_v37, 0.0  ;;  %v2983_v7 = vadd.f32 %v3508_v47, %v2831_v28  ;;  %v3556_v28 = vld [vmem:[#allocation3 + $0x60] sm:$0xff]  }
 0x417   : > { %v3462_v27 = vpack.c.bf16 %v3016_v8, %v3016_v8  ;;  %v3017_v38 = vmax.f32 %v2985_v50, 0.0  ;;  %v3535_v50 = vunpack.c.l.bf16 %v3557_v36 }
 0x418   : > { %v3460_v34 = vpack.c.bf16 %v3014_v12, %v3014_v12  ;;  %v3015_v40 = vmax.f32 %v2983_v7, 0.0  ;;  %v3531_v7 = vunpack.c.l.bf16 %v3556_v28 }
 0x419   : > { %3177 = vst.msk [vmem:[%s5023_s30 + $0x38] sm:$0xf] %vm3162_vm2, %v3462_v27  ;;  %v3463_v63 = vpack.c.bf16 %v3017_v38, %v3017_v38 }
 0x41a   : > { %3175 = vst.msk [vmem:[%s5023_s30 + $0x30] sm:$0xf] %vm3162_vm2, %v3460_v34  ;;  %v3461_v61 = vpack.c.bf16 %v3015_v40, %v3015_v40  ;;  %v3536_v34 = vunpack.c.h.bf16 %v3557_v36 }
 0x41b   : > { %3178 = vst.msk [vmem:[%s5023_s30 + $0x3c] sm:$0xf] %vm3162_vm2, %v3463_v63 }
 0x41c   : > { %3176 = vst.msk [vmem:[%s5023_s30 + $0x34] sm:$0xf] %vm3162_vm2, %v3461_v61  ;;  %v3532_v61 = vunpack.c.h.bf16 %v3556_v28 }
 0x420   : > { %v3810_v45 = vpop.f32.mrb[64].mxu0 }
 0x421   : > { %v2852_v22 = vadd.f32 %v3810_v45, %v5014_v31  ;;  %v2843_v23 = vpop.f32.mrb[65].mxu0 }
 0x422   : > { %v2844_v56 = vadd.f32 %v5014_v31, %v2843_v23  ;;  %v3811_v52 = vpop.f32.mrb[66].mxu0 }
 0x423   : > { %v2988_v17 = vadd.f32 %v3519_v53, %v2852_v22  ;;  %v2855_v39 = vadd.f32 %v3811_v52, %v5014_v31  ;;  %v2846_v44 = vpop.f32.mrb[67].mxu0  ;;  %v3559_v52 = vld [vmem:[#allocation3 + $0x78] sm:$0xff]  }
 0x424   : > { %v2986_v25 = vadd.f32 %v3515_v29, %v2844_v56  ;;  %v2847_v48 = vadd.f32 %v5014_v31, %v2846_v44 }
 0x425   : > { %v3020_v43 = vmax.f32 %v2988_v17, 0.0  ;;  %v2989_v2 = vadd.f32 %v3520_v4, %v2855_v39  ;;  %v3558_v39 = vld [vmem:[#allocation3 + $0x70] sm:$0xff]  }
 0x426   : > { %v3018_v6 = vmax.f32 %v2986_v25, 0.0  ;;  %v2987_v1 = vadd.f32 %v3516_v58, %v2847_v48 }
 0x427   : > { %v3466_v0 = vpack.c.bf16 %v3020_v43, %v3020_v43  ;;  %v3021_v60 = vmax.f32 %v2989_v2, 0.0  ;;  %v3543_v43 = vunpack.c.l.bf16 %v3559_v52 }
 0x428   : > { %v3464_v13 = vpack.c.bf16 %v3018_v6, %v3018_v6  ;;  %v3019_v54 = vmax.f32 %v2987_v1, 0.0  ;;  %v3539_v1 = vunpack.c.l.bf16 %v3558_v39 }
 0x429   : > { %3181 = vst.msk [vmem:[%s5023_s30 + $0x48] sm:$0xf] %vm3162_vm2, %v3466_v0  ;;  %v3467_v10 = vpack.c.bf16 %v3021_v60, %v3021_v60 }
 0x42a   : > { %3179 = vst.msk [vmem:[%s5023_s30 + $0x40] sm:$0xf] %vm3162_vm2, %v3464_v13  ;;  %v3465_v20 = vpack.c.bf16 %v3019_v54, %v3019_v54  ;;  %v3544_v13 = vunpack.c.h.bf16 %v3559_v52 }
 0x42b   : > { %3182 = vst.msk [vmem:[%s5023_s30 + $0x4c] sm:$0xf] %vm3162_vm2, %v3467_v10 }
 0x42c   : > { %3180 = vst.msk [vmem:[%s5023_s30 + $0x44] sm:$0xf] %vm3162_vm2, %v3465_v20  ;;  %v3540_v20 = vunpack.c.h.bf16 %v3558_v39 }
 0x430   : > { %v3814_v26 = vpop.f32.mrb[68].mxu0 }
 0x431   : > { %v2868_v21 = vadd.f32 %v3814_v26, %v5014_v31  ;;  %v2859_v32 = vpop.f32.mrb[69].mxu0 }
 0x432   : > { %v2860_v49 = vadd.f32 %v5014_v31, %v2859_v32  ;;  %v3815_v19 = vpop.f32.mrb[70].mxu0 }
 0x433   : > { %v2992_v24 = vadd.f32 %v3527_v15, %v2868_v21  ;;  %v2871_v5 = vadd.f32 %v3815_v19, %v5014_v31  ;;  %v2862_v9 = vpop.f32.mrb[71].mxu0 }
 0x434   : > { %v2990_v30 = vadd.f32 %v3523_v18, %v2860_v49  ;;  %v2863_v46 = vadd.f32 %v5014_v31, %v2862_v9 }
 0x435   : > { %v3024_v11 = vmax.f32 %v2992_v24, 0.0  ;;  %v2993_v14 = vadd.f32 %v3528_v16, %v2871_v5 }
 0x436   : > { %v3022_v55 = vmax.f32 %v2990_v30, 0.0  ;;  %v2991_v42 = vadd.f32 %v3524_v51, %v2863_v46 }
 0x437   : > { %v3470_v57 = vpack.c.bf16 %v3024_v11, %v3024_v11  ;;  %v3025_v47 = vmax.f32 %v2993_v14, 0.0 }
 0x438   : > { %v3468_v33 = vpack.c.bf16 %v3022_v55, %v3022_v55  ;;  %v3023_v59 = vmax.f32 %v2991_v42, 0.0 }
 0x439   : > { %3185 = vst.msk [vmem:[%s5023_s30 + $0x58] sm:$0xf] %vm3162_vm2, %v3470_v57  ;;  %v3471_v37 = vpack.c.bf16 %v3025_v47, %v3025_v47 }
 0x43a   : > { %3183 = vst.msk [vmem:[%s5023_s30 + $0x50] sm:$0xf] %vm3162_vm2, %v3468_v33  ;;  %v3469_v8 = vpack.c.bf16 %v3023_v59, %v3023_v59 }
 0x43b   : > { %3186 = vst.msk [vmem:[%s5023_s30 + $0x5c] sm:$0xf] %vm3162_vm2, %v3471_v37 }
 0x43c   : > { %3184 = vst.msk [vmem:[%s5023_s30 + $0x54] sm:$0xf] %vm3162_vm2, %v3469_v8  ;;  %v3818_v12 = vpop.f32.mrb[72].mxu0 }
 0x43d   : > { %v2884_v27 = vadd.f32 %v3818_v12, %v5014_v31  ;;  %v2875_v38 = vpop.f32.mrb[73].mxu0 }
 0x43e   : > { %v2876_v40 = vadd.f32 %v5014_v31, %v2875_v38  ;;  %v3819_v63 = vpop.f32.mrb[74].mxu0 }
 0x43f   : > { %v2996_v62 = vadd.f32 %v3535_v50, %v2884_v27  ;;  %v2887_v3 = vadd.f32 %v3819_v63, %v5014_v31  ;;  %v2878_v53 = vpop.f32.mrb[75].mxu0 }
 0x440   : > { %v2994_v45 = vadd.f32 %v3531_v7, %v2876_v40  ;;  %v2879_v29 = vadd.f32 %v5014_v31, %v2878_v53 }
 0x441   : > { %v3028_v22 = vmax.f32 %v2996_v62, 0.0  ;;  %v2997_v23 = vadd.f32 %v3536_v34, %v2887_v3 }
 0x442   : > { %v3026_v4 = vmax.f32 %v2994_v45, 0.0  ;;  %v2995_v56 = vadd.f32 %v3532_v61, %v2879_v29 }
 0x443   : > { %v3474_v58 = vpack.c.bf16 %v3028_v22, %v3028_v22  ;;  %v3029_v17 = vmax.f32 %v2997_v23, 0.0 }
 0x444   : > { %v3472_v44 = vpack.c.bf16 %v3026_v4, %v3026_v4  ;;  %v3027_v25 = vmax.f32 %v2995_v56, 0.0 }
 0x445   : > { %3189 = vst.msk [vmem:[%s5023_s30 + $0x68] sm:$0xf] %vm3162_vm2, %v3474_v58  ;;  %v3475_v48 = vpack.c.bf16 %v3029_v17, %v3029_v17 }
 0x446   : > { %3187 = vst.msk [vmem:[%s5023_s30 + $0x60] sm:$0xf] %vm3162_vm2, %v3472_v44  ;;  %v3473_v2 = vpack.c.bf16 %v3027_v25, %v3027_v25  ;;  %v3822_v6 = vpop.f32.mrb[76].mxu0 }
 0x447   : > { %3190 = vst.msk [vmem:[%s5023_s30 + $0x6c] sm:$0xf] %vm3162_vm2, %v3475_v48  ;;  %v2900_v0 = vadd.f32 %v3822_v6, %v5014_v31  ;;  %v2891_v60 = vpop.f32.mrb[77].mxu0 }
 0x448   : > { %3188 = vst.msk [vmem:[%s5023_s30 + $0x64] sm:$0xf] %vm3162_vm2, %v3473_v2  ;;  %v2892_v54 = vadd.f32 %v5014_v31, %v2891_v60  ;;  %v3823_v10 = vpop.f32.mrb[78].mxu0 }
 0x449   : > { %v3000_v41 = vadd.f32 %v3543_v43, %v2900_v0  ;;  %v2903_v35 = vadd.f32 %v3823_v10, %v5014_v31  ;;  %v2894_v15 = vpop.f32.mrb[79].mxu0 }
 0x44a   : > { %v2998_v26 = vadd.f32 %v3539_v1, %v2892_v54  ;;  %v2895_v18 = vadd.f32 %v5014_v31, %v2894_v15 }
 0x44b   : > { %v3032_v21 = vmax.f32 %v3000_v41, 0.0  ;;  %v3001_v32 = vadd.f32 %v3544_v13, %v2903_v35 }
 0x44c   : > { %v3030_v16 = vmax.f32 %v2998_v26, 0.0  ;;  %v2999_v49 = vadd.f32 %v3540_v20, %v2895_v18 }
 0x44d   : > { %v3478_v19 = vpack.c.bf16 %v3032_v21, %v3032_v21  ;;  %v3033_v51 = vmax.f32 %v3001_v32, 0.0 }
 0x44e   : > { %v3476_v24 = vpack.c.bf16 %v3030_v16, %v3030_v16  ;;  %v3031_v5 = vmax.f32 %v2999_v49, 0.0 }
 0x44f   : > { %3193 = vst.msk [vmem:[%s5023_s30 + $0x78] sm:$0xf] %vm3162_vm2, %v3478_v19  ;;  %v3479_v9 = vpack.c.bf16 %v3033_v51, %v3033_v51 }
 0x450   : > { %3191 = vst.msk [vmem:[%s5023_s30 + $0x70] sm:$0xf] %vm3162_vm2, %v3476_v24  ;;  %v3477_v31 = vpack.c.bf16 %v3031_v5, %v3031_v5 }
 0x451   : > { %3194 = vst.msk [vmem:[%s5023_s30 + $0x7c] sm:$0xf] %vm3162_vm2, %v3479_v9 }
 0x452   : > { %3192 = vst.msk [vmem:[%s5023_s30 + $0x74] sm:$0xf] %vm3162_vm2, %v3477_v31 }
 0x453   : > { %4027 = shalt.err (!%p4024_p13)
}
 0x454   : > { %s4028_s23 = scalar_lea.hbm %s5117_s15, 2048  ;;  %s4032_s21 = scalar_lea.hbm %s5182_s7, 4096 }
 0x455   : > { %p4029_p1 = scmp.ne.s32.totalorder %s5117_s15, %s4028_s23  ;;  %p4033_p6 = scmp.lt.u32.totalorder %s5117_s15, %s5182_s7 }
 0x456   : > { %p4034_p8 = scmp.lt.u32.totalorder %s4032_s21, %s4028_s23  ;;  %p4036_p7 = scmp.lt.u32.totalorder %s4028_s23, %s5117_s15 }
 0x457   : > { %p4030_p3 = pnand %p4029_p1, %p5230_p10 }
 0x458   : > { %p4035_p4 = por %p4034_p8, %p4033_p6 }
 0x459   : > { %p4031_p5 = pneg %p4030_p3 }
 0x45a   : > { %p4037_p12 = por %p4036_p7, %p4035_p4 }
 0x45c   : > { %p4038_p0 = pnand %p4037_p12, %p4031_p5 }
 0x45e   : > { %4041 = shalt.err (!%p4038_p0)
}
 0x45f   : > { %s4105_s11 = smov 64   ;;  %s4106_s27 = smov 4  }
 0x460   : > { %3897 = dma.vmem_to_hbm [thread:$0]  (%p5230_p10), %s5121_s8, 2048, %s5117_s15, %s5129_s17, %s4105_s11, %s4105_s11, %s4106_s27  }
 0x461 PF: > { %p3907_p2 = scmp.ge.s32.totalorder %s4096_s29, 2  ;;  %s3227_s16 = sand.u32 1, %s4076_s24  }
 0x462   : > { %p5231_p9 = scmp.ne.s32.totalorder %s5188_s13, 0  ;;  %s3228_s19 = scalar_lea.sflag [#allocation5], %s3227_s16 }
 0x464   : > { %p3904_p11 = pnand %p3907_p2, %p5231_p9 }
 0x466   : > { %4071 = dma.done.wait (!%p3904_p11), %s3228_s19, 2048  }
 0x467   : > { %4073 = vsyncadd (!%p3904_p11), %s3228_s19, 4294965248  ;;  %s21_s29 = sadd.s32 1, %s4096_s29   ;;  %s5232_s24 = smov %s4080_s25 }
 0x468   : > { %p18_p13 = scmp.ge.s32.totalorder %s21_s29, 4   ;;  %s5233_s25 = smov %s4084_s26 }
 0x469   : > { %s5234_s26 = smov %s4199_s14  ;;  %s5235_s27 = smov %s4092_s28 }
 0x46a   : > { %s5236_s28 = smov %s5238_s9  ;;  %20 = sbr.rel (!%p18_p13) target bundleno = 5 (0x5), region = 91 }
 0x471   :  { %3233 = vsyncpa [#allocation4], 1 }
 0x472   :  { %3235 = vsyncpa [#allocation4 + $0x1], 1 }
 0x473   :  { %3236 = vsyncpa [#allocation5], 1 }
 0x474   :  { %3238 = vsyncpa [#allocation5 + $0x1], 1 }

</bundles_post_ra>
